<compile_context>
chip_gen: v7x
topology: tpu7x:2x2x1
jax: 0.10.0
libtpu: 0.0.40
codegen_flags: <defaults>
</compile_context>

<pallas_src>
import jax
import jax.numpy as jnp
from jax.experimental import pallas as pl
from jax.experimental.pallas import tpu as pltpu


def _transfusion_kernel(x_ref, wdw_ref, g1_ref, b1_ref, w2_ref, g2_ref,
                        b2_ref, out_ref, xp_ref):
    eps = 1e-5
    N, _C, H, W = x_ref.shape
    HW = out_ref.shape[-1]

    # ---- zero-padded halo built in VMEM scratch (no HBM pad round-trip) ----
    xp_ref[...] = jnp.zeros_like(xp_ref)
    xp_ref[:, :, 1:H + 1, 1:W + 1] = x_ref[...].astype(jnp.float32)
    xp = xp_ref[...]                                  # (N, C, H+2, W+2)

    wdw = wdw_ref[...].astype(jnp.float32)            # (9, C, 1, 1)

    # ---- depthwise 3x3 conv; lane (kw) shifts hoisted out of inner loop ----
    acc = jnp.zeros((N, _C, H, W), jnp.float32)
    for kw in range(3):
        xw = xp[:, :, :, kw:kw + W]                   # one lane-offset slice per kw
        for kh in range(3):                           # sublane-only slices inside
            acc = acc + xw[:, :, kh:kh + H, :] * wdw[kh * 3 + kw]

    inv_cnt = 1.0 / float(N * H * W)

    # ---- BN1 (training-mode batch stats, single pass) + ReLU, folded affine
    def _reduce_nhw(v):                               # (N,C,H,W) -> (1,C,1,1)
        r = jnp.sum(v, axis=-1, keepdims=True)
        r = jnp.sum(r, axis=-2, keepdims=True)
        return jnp.sum(r, axis=0, keepdims=True)

    mean1 = _reduce_nhw(acc) * inv_cnt
    msq1 = _reduce_nhw(acc * acc) * inv_cnt
    var1 = jnp.maximum(msq1 - mean1 * mean1, 0.0)     # clamp tiny cancellation
    scale1 = g1_ref[...] * jax.lax.rsqrt(var1 + eps)  # (1,C,1,1)
    shift1 = b1_ref[...] - mean1 * scale1
    y = jnp.maximum(acc * scale1 + shift1, 0.0)       # (N,C,H,W)

    # ---- 1x1 conv == one MXU matmul over a lane-dense (C, N*H*W) slab ----
    yr = y.reshape(N, _C, HW)                         # collapse (H,W) -> HW
    yf = jnp.concatenate([yr[n] for n in range(N)], axis=-1)   # (C, N*HW)
    # TODO(synk): for production channel counts use bf16 matmul inputs and a
    # channels-on-lanes layout; at C=4/Cout=8 the MXU call is tiny either way.
    z = jnp.dot(w2_ref[...].astype(jnp.float32), yf,
                preferred_element_type=jnp.float32)   # (Cout, N*HW)

    # ---- BN2 (single pass, lane-axis reduction) + ReLU, folded affine ----
    mean2 = jnp.sum(z, axis=-1, keepdims=True) * inv_cnt        # (Cout,1)
    msq2 = jnp.sum(z * z, axis=-1, keepdims=True) * inv_cnt
    var2 = jnp.maximum(msq2 - mean2 * mean2, 0.0)
    scale2 = g2_ref[...] * jax.lax.rsqrt(var2 + eps)
    shift2 = b2_ref[...] - mean2 * scale2
    out = jnp.maximum(z * scale2 + shift2, 0.0)       # (Cout, N*HW)

    # ---- lane-dense stores: 256-lane rows at 128-aligned lane offsets ----
    for n in range(N):
        out_ref[n] = out[:, n * HW:(n + 1) * HW].astype(out_ref.dtype)


def transfusion_forward(x, params):
    """x: (N, C, H, W) float32. params: (wdw, g1, b1, w2, g2, b2)."""
    wdw, g1, b1, w2, g2, b2 = params
    N, C, H, W = x.shape
    Cout = w2.shape[0]
    HW = H * W

    vmem = pl.BlockSpec(memory_space=pltpu.MemorySpace.VMEM)
    out_flat = pl.pallas_call(
        _transfusion_kernel,
        out_shape=jax.ShapeDtypeStruct((N, Cout, HW), x.dtype),  # lane-dense
        in_specs=[vmem] * 7,
        out_specs=vmem,
        scratch_shapes=[pltpu.VMEM((N, C, H + 2, W + 2), jnp.float32)],
        # explicit VMEM budget; kernel live set is << 1 MiB at these shapes and
        # fits the smallest scoped default (v5e 16 MiB / v7x 32 MiB) with room.
        compiler_params=pltpu.CompilerParams(
            vmem_limit_bytes=32 * 1024 * 1024),
    )(x, wdw, g1, b1, w2, g2, b2)
    # contiguous (free) reshape back to NCHW outside the kernel
    return out_flat.reshape(N, Cout, H, W)


def init_params(key, channel, model_num=2):
    """Deterministic synthetic init matching the PyTorch parameter shapes."""
    k1, k2, k3, k4, k5, k6 = jax.random.split(key, 6)
    cout = channel * model_num
    # conv1: depthwise, PyTorch weight shape (C, 1, 3, 3), fan_in = 9
    conv1_w = jax.random.uniform(k1, (channel, 1, 3, 3), jnp.float32,
                                 minval=-1.0 / 3.0, maxval=1.0 / 3.0)
    # rearrange to (9, C, 1, 1) so each tap broadcasts cleanly in the kernel
    wdw = jnp.transpose(conv1_w.reshape(channel, 9), (1, 0)).reshape(
        9, channel, 1, 1)
    # conv1_1: 1x1, PyTorch weight shape (2C, C, 1, 1), fan_in = C
    bound = 1.0 / (channel ** 0.5)
    w2 = jax.random.uniform(k2, (cout, channel), jnp.float32,
                            minval=-bound, maxval=bound)
    # BatchNorm affine params (perturbed so the affine path is exercised)
    g1 = (1.0 + 0.1 * jax.random.normal(k3, (channel,))).reshape(channel, 1, 1)
    b1 = (0.05 * jax.random.normal(k4, (channel,))).reshape(channel, 1, 1)
    g2 = (1.0 + 0.1 * jax.random.normal(k5, (cout,))).reshape(cout, 1)
    b2 = (0.05 * jax.random.normal(k6, (cout,))).reshape(cout, 1)
    # TODO(synk): running-stat (eval-mode) BN not modeled; training-mode batch
    # statistics are computed in-kernel, matching a fresh module's forward.
    return (wdw.astype(jnp.float32), g1.astype(jnp.float32),
            b1.astype(jnp.float32), w2.astype(jnp.float32),
            g2.astype(jnp.float32), b2.astype(jnp.float32))


def _reference_forward(x, params):
    """Pure-JAX reference of the same training-mode forward."""
    wdw, g1, b1, w2, g2, b2 = params
    eps = 1e-5
    N, C, H, W = x.shape
    xpad = jnp.pad(x, ((0, 0), (0, 0), (1, 1), (1, 1)))
    acc = jnp.zeros((N, C, H, W), jnp.float32)
    for k in range(9):
        kh, kw = divmod(k, 3)
        acc = acc + xpad[:, :, kh:kh + H, kw:kw + W] * wdw[k]

    def bn_relu(v, g, b):
        mean = jnp.mean(v, axis=(0, 2, 3), keepdims=True)
        var = jnp.mean((v - mean) ** 2, axis=(0, 2, 3), keepdims=True)
        return jnp.maximum(g * (v - mean) * jax.lax.rsqrt(var + eps) + b, 0.0)

    y = bn_relu(acc, g1, b1)
    z = jnp.einsum('oc,nchw->nohw', w2, y)
    cout = w2.shape[0]
    return bn_relu(z, g2.reshape(cout, 1, 1), b2.reshape(cout, 1, 1))


if __name__ == "__main__":
    channel, spatial, model_num = 4, 16, 2
    N = 2
    key = jax.random.PRNGKey(0)
    kx, kp = jax.random.split(key)
    x = jax.random.normal(kx, (N, channel, spatial, spatial), jnp.float32)
    params = init_params(kp, channel, model_num)

    out = jax.block_until_ready(transfusion_forward(x, params))
    assert out.shape == (N, channel * model_num, spatial, spatial), out.shape
    assert bool(jnp.all(jnp.isfinite(out))) and bool(jnp.all(out >= 0.0))

    ref = jax.block_until_ready(_reference_forward(x, params))
    assert bool(jnp.allclose(out, ref, atol=1e-3, rtol=1e-3)), \
        float(jnp.max(jnp.abs(out - ref)))
    print("KERNEL_OK")
</pallas_src>

<mosaic_0001>
module attributes {stable_mosaic.version = 11 : i64} {
  func.func @_transfusion_kernel(%arg0: memref<2x4x16x16xf32, #tpu.memory_space<vmem>>, %arg1: memref<9x4x1x1xf32, #tpu.memory_space<vmem>>, %arg2: memref<4x1x1xf32, #tpu.memory_space<vmem>>, %arg3: memref<4x1x1xf32, #tpu.memory_space<vmem>>, %arg4: memref<8x4xf32, #tpu.memory_space<vmem>>, %arg5: memref<8x1xf32, #tpu.memory_space<vmem>>, %arg6: memref<8x1xf32, #tpu.memory_space<vmem>>, %arg7: memref<2x8x256xf32, #tpu.memory_space<vmem>>, %arg8: memref<2x4x18x18xf32, #tpu.memory_space<vmem>>) attributes {dimension_semantics = [], scalar_prefetch = 0 : i64, scratch_operands = 1 : i64, tpu.core_type = #tpu.core_type<tc>} {
    %cst = arith.constant 0.000000e+00 : f32
    %0 = vector.broadcast %cst : f32 to vector<2x4x18x18xf32>
    %c0 = arith.constant 0 : index
    %c0_0 = arith.constant 0 : index
    %c0_1 = arith.constant 0 : index
    %c0_2 = arith.constant 0 : index
    %1 = vector.load %arg8[%c0, %c0_0, %c0_1, %c0_2] : memref<2x4x18x18xf32, #tpu.memory_space<vmem>>, vector<2x4x18x18xf32>
    tpu.vector_store %arg8[%c0, %c0_0, %c0_1, %c0_2], %0 {strides = array<i32>} : memref<2x4x18x18xf32, #tpu.memory_space<vmem>>, vector<2x4x18x18xf32>,
    %c0_3 = arith.constant 0 : index
    %c0_4 = arith.constant 0 : index
    %c0_5 = arith.constant 0 : index
    %c0_6 = arith.constant 0 : index
    %2 = vector.load %arg0[%c0_3, %c0_4, %c0_5, %c0_6] : memref<2x4x16x16xf32, #tpu.memory_space<vmem>>, vector<2x4x16x16xf32>
    %c0_7 = arith.constant 0 : index
    %c0_8 = arith.constant 0 : index
    %c1 = arith.constant 1 : index
    %c1_9 = arith.constant 1 : index
    %3 = vector.load %arg8[%c0_7, %c0_8, %c1, %c1_9] : memref<2x4x18x18xf32, #tpu.memory_space<vmem>>, vector<2x4x16x16xf32>
    tpu.vector_store %arg8[%c0_7, %c0_8, %c1, %c1_9], %2 {strides = array<i32>} : memref<2x4x18x18xf32, #tpu.memory_space<vmem>>, vector<2x4x16x16xf32>,
    %c0_10 = arith.constant 0 : index
    %c0_11 = arith.constant 0 : index
    %c0_12 = arith.constant 0 : index
    %c0_13 = arith.constant 0 : index
    %4 = vector.load %arg8[%c0_10, %c0_11, %c0_12, %c0_13] : memref<2x4x18x18xf32, #tpu.memory_space<vmem>>, vector<2x4x18x18xf32>
    %c0_14 = arith.constant 0 : index
    %c0_15 = arith.constant 0 : index
    %c0_16 = arith.constant 0 : index
    %c0_17 = arith.constant 0 : index
    %5 = vector.load %arg1[%c0_14, %c0_15, %c0_16, %c0_17] : memref<9x4x1x1xf32, #tpu.memory_space<vmem>>, vector<9x4x1x1xf32>
    %cst_18 = arith.constant 0.000000e+00 : f32
    %6 = vector.broadcast %cst_18 : f32 to vector<2x4x16x16xf32>
    %7 = vector.extract_strided_slice %4 {offsets = [0, 0, 0, 0], sizes = [2, 4, 18, 16], strides = [1, 1, 1, 1]} : vector<2x4x18x18xf32> to vector<2x4x18x16xf32>
    %8 = vector.extract_strided_slice %7 {offsets = [0, 0, 0, 0], sizes = [2, 4, 16, 16], strides = [1, 1, 1, 1]} : vector<2x4x18x16xf32> to vector<2x4x16x16xf32>
    %9 = vector.extract_strided_slice %5 {offsets = [0, 0, 0, 0], sizes = [1, 4, 1, 1], strides = [1, 1, 1, 1]} : vector<9x4x1x1xf32> to vector<1x4x1x1xf32>
    %10 = vector.shape_cast %9 : vector<1x4x1x1xf32> to vector<4x1x1xf32>
    %11 = vector.shape_cast %10 : vector<4x1x1xf32> to vector<1x4x1x1xf32>
    %12 = vector.broadcast %11 : vector<1x4x1x1xf32> to vector<2x4x16x16xf32>
    %13 = arith.mulf %8, %12 : vector<2x4x16x16xf32>
    %14 = arith.addf %6, %13 : vector<2x4x16x16xf32>
    %15 = vector.extract_strided_slice %7 {offsets = [0, 0, 1, 0], sizes = [2, 4, 16, 16], strides = [1, 1, 1, 1]} : vector<2x4x18x16xf32> to vector<2x4x16x16xf32>
    %16 = vector.extract_strided_slice %5 {offsets = [3, 0, 0, 0], sizes = [1, 4, 1, 1], strides = [1, 1, 1, 1]} : vector<9x4x1x1xf32> to vector<1x4x1x1xf32>
    %17 = vector.shape_cast %16 : vector<1x4x1x1xf32> to vector<4x1x1xf32>
    %18 = vector.shape_cast %17 : vector<4x1x1xf32> to vector<1x4x1x1xf32>
    %19 = vector.broadcast %18 : vector<1x4x1x1xf32> to vector<2x4x16x16xf32>
    %20 = arith.mulf %15, %19 : vector<2x4x16x16xf32>
    %21 = arith.addf %14, %20 : vector<2x4x16x16xf32>
    %22 = vector.extract_strided_slice %7 {offsets = [0, 0, 2, 0], sizes = [2, 4, 16, 16], strides = [1, 1, 1, 1]} : vector<2x4x18x16xf32> to vector<2x4x16x16xf32>
    %23 = vector.extract_strided_slice %5 {offsets = [6, 0, 0, 0], sizes = [1, 4, 1, 1], strides = [1, 1, 1, 1]} : vector<9x4x1x1xf32> to vector<1x4x1x1xf32>
    %24 = vector.shape_cast %23 : vector<1x4x1x1xf32> to vector<4x1x1xf32>
    %25 = vector.shape_cast %24 : vector<4x1x1xf32> to vector<1x4x1x1xf32>
    %26 = vector.broadcast %25 : vector<1x4x1x1xf32> to vector<2x4x16x16xf32>
    %27 = arith.mulf %22, %26 : vector<2x4x16x16xf32>
    %28 = arith.addf %21, %27 : vector<2x4x16x16xf32>
    %29 = vector.extract_strided_slice %4 {offsets = [0, 0, 0, 1], sizes = [2, 4, 18, 16], strides = [1, 1, 1, 1]} : vector<2x4x18x18xf32> to vector<2x4x18x16xf32>
    %30 = vector.extract_strided_slice %29 {offsets = [0, 0, 0, 0], sizes = [2, 4, 16, 16], strides = [1, 1, 1, 1]} : vector<2x4x18x16xf32> to vector<2x4x16x16xf32>
    %31 = vector.extract_strided_slice %5 {offsets = [1, 0, 0, 0], sizes = [1, 4, 1, 1], strides = [1, 1, 1, 1]} : vector<9x4x1x1xf32> to vector<1x4x1x1xf32>
    %32 = vector.shape_cast %31 : vector<1x4x1x1xf32> to vector<4x1x1xf32>
    %33 = vector.shape_cast %32 : vector<4x1x1xf32> to vector<1x4x1x1xf32>
    %34 = vector.broadcast %33 : vector<1x4x1x1xf32> to vector<2x4x16x16xf32>
    %35 = arith.mulf %30, %34 : vector<2x4x16x16xf32>
    %36 = arith.addf %28, %35 : vector<2x4x16x16xf32>
    %37 = vector.extract_strided_slice %29 {offsets = [0, 0, 1, 0], sizes = [2, 4, 16, 16], strides = [1, 1, 1, 1]} : vector<2x4x18x16xf32> to vector<2x4x16x16xf32>
    %38 = vector.extract_strided_slice %5 {offsets = [4, 0, 0, 0], sizes = [1, 4, 1, 1], strides = [1, 1, 1, 1]} : vector<9x4x1x1xf32> to vector<1x4x1x1xf32>
    %39 = vector.shape_cast %38 : vector<1x4x1x1xf32> to vector<4x1x1xf32>
    %40 = vector.shape_cast %39 : vector<4x1x1xf32> to vector<1x4x1x1xf32>
    %41 = vector.broadcast %40 : vector<1x4x1x1xf32> to vector<2x4x16x16xf32>
    %42 = arith.mulf %37, %41 : vector<2x4x16x16xf32>
    %43 = arith.addf %36, %42 : vector<2x4x16x16xf32>
    %44 = vector.extract_strided_slice %29 {offsets = [0, 0, 2, 0], sizes = [2, 4, 16, 16], strides = [1, 1, 1, 1]} : vector<2x4x18x16xf32> to vector<2x4x16x16xf32>
    %45 = vector.extract_strided_slice %5 {offsets = [7, 0, 0, 0], sizes = [1, 4, 1, 1], strides = [1, 1, 1, 1]} : vector<9x4x1x1xf32> to vector<1x4x1x1xf32>
    %46 = vector.shape_cast %45 : vector<1x4x1x1xf32> to vector<4x1x1xf32>
    %47 = vector.shape_cast %46 : vector<4x1x1xf32> to vector<1x4x1x1xf32>
    %48 = vector.broadcast %47 : vector<1x4x1x1xf32> to vector<2x4x16x16xf32>
    %49 = arith.mulf %44, %48 : vector<2x4x16x16xf32>
    %50 = arith.addf %43, %49 : vector<2x4x16x16xf32>
    %51 = vector.extract_strided_slice %4 {offsets = [0, 0, 0, 2], sizes = [2, 4, 18, 16], strides = [1, 1, 1, 1]} : vector<2x4x18x18xf32> to vector<2x4x18x16xf32>
    %52 = vector.extract_strided_slice %51 {offsets = [0, 0, 0, 0], sizes = [2, 4, 16, 16], strides = [1, 1, 1, 1]} : vector<2x4x18x16xf32> to vector<2x4x16x16xf32>
    %53 = vector.extract_strided_slice %5 {offsets = [2, 0, 0, 0], sizes = [1, 4, 1, 1], strides = [1, 1, 1, 1]} : vector<9x4x1x1xf32> to vector<1x4x1x1xf32>
    %54 = vector.shape_cast %53 : vector<1x4x1x1xf32> to vector<4x1x1xf32>
    %55 = vector.shape_cast %54 : vector<4x1x1xf32> to vector<1x4x1x1xf32>
    %56 = vector.broadcast %55 : vector<1x4x1x1xf32> to vector<2x4x16x16xf32>
    %57 = arith.mulf %52, %56 : vector<2x4x16x16xf32>
    %58 = arith.addf %50, %57 : vector<2x4x16x16xf32>
    %59 = vector.extract_strided_slice %51 {offsets = [0, 0, 1, 0], sizes = [2, 4, 16, 16], strides = [1, 1, 1, 1]} : vector<2x4x18x16xf32> to vector<2x4x16x16xf32>
    %60 = vector.extract_strided_slice %5 {offsets = [5, 0, 0, 0], sizes = [1, 4, 1, 1], strides = [1, 1, 1, 1]} : vector<9x4x1x1xf32> to vector<1x4x1x1xf32>
    %61 = vector.shape_cast %60 : vector<1x4x1x1xf32> to vector<4x1x1xf32>
    %62 = vector.shape_cast %61 : vector<4x1x1xf32> to vector<1x4x1x1xf32>
    %63 = vector.broadcast %62 : vector<1x4x1x1xf32> to vector<2x4x16x16xf32>
    %64 = arith.mulf %59, %63 : vector<2x4x16x16xf32>
    %65 = arith.addf %58, %64 : vector<2x4x16x16xf32>
    %66 = vector.extract_strided_slice %51 {offsets = [0, 0, 2, 0], sizes = [2, 4, 16, 16], strides = [1, 1, 1, 1]} : vector<2x4x18x16xf32> to vector<2x4x16x16xf32>
    %67 = vector.extract_strided_slice %5 {offsets = [8, 0, 0, 0], sizes = [1, 4, 1, 1], strides = [1, 1, 1, 1]} : vector<9x4x1x1xf32> to vector<1x4x1x1xf32>
    %68 = vector.shape_cast %67 : vector<1x4x1x1xf32> to vector<4x1x1xf32>
    %69 = vector.shape_cast %68 : vector<4x1x1xf32> to vector<1x4x1x1xf32>
    %70 = vector.broadcast %69 : vector<1x4x1x1xf32> to vector<2x4x16x16xf32>
    %71 = arith.mulf %66, %70 : vector<2x4x16x16xf32>
    %72 = arith.addf %65, %71 : vector<2x4x16x16xf32>
    %cst_19 = arith.constant dense<0.000000e+00> : vector<2x4x16xf32>
    %73 = vector.multi_reduction <add>, %72, %cst_19 [3] : vector<2x4x16x16xf32> to vector<2x4x16xf32>
    %74 = vector.shape_cast %73 : vector<2x4x16xf32> to vector<2x4x16x1xf32>
    %cst_20 = arith.constant dense<0.000000e+00> : vector<2x4x1xf32>
    %75 = vector.multi_reduction <add>, %74, %cst_20 [2] : vector<2x4x16x1xf32> to vector<2x4x1xf32>
    %76 = vector.shape_cast %75 : vector<2x4x1xf32> to vector<2x4x1x1xf32>
    %cst_21 = arith.constant dense<0.000000e+00> : vector<4x1x1xf32>
    %77 = vector.multi_reduction <add>, %76, %cst_21 [0] : vector<2x4x1x1xf32> to vector<4x1x1xf32>
    %78 = vector.shape_cast %77 : vector<4x1x1xf32> to vector<1x4x1x1xf32>
    %cst_22 = arith.constant 0.001953125 : f32
    %79 = vector.broadcast %cst_22 : f32 to vector<1x4x1x1xf32>
    %80 = arith.mulf %78, %79 : vector<1x4x1x1xf32>
    %81 = arith.mulf %72, %72 : vector<2x4x16x16xf32>
    %cst_23 = arith.constant dense<0.000000e+00> : vector<2x4x16xf32>
    %82 = vector.multi_reduction <add>, %81, %cst_23 [3] : vector<2x4x16x16xf32> to vector<2x4x16xf32>
    %83 = vector.shape_cast %82 : vector<2x4x16xf32> to vector<2x4x16x1xf32>
    %cst_24 = arith.constant dense<0.000000e+00> : vector<2x4x1xf32>
    %84 = vector.multi_reduction <add>, %83, %cst_24 [2] : vector<2x4x16x1xf32> to vector<2x4x1xf32>
    %85 = vector.shape_cast %84 : vector<2x4x1xf32> to vector<2x4x1x1xf32>
    %cst_25 = arith.constant dense<0.000000e+00> : vector<4x1x1xf32>
    %86 = vector.multi_reduction <add>, %85, %cst_25 [0] : vector<2x4x1x1xf32> to vector<4x1x1xf32>
    %87 = vector.shape_cast %86 : vector<4x1x1xf32> to vector<1x4x1x1xf32>
    %cst_26 = arith.constant 0.001953125 : f32
    %88 = vector.broadcast %cst_26 : f32 to vector<1x4x1x1xf32>
    %89 = arith.mulf %87, %88 : vector<1x4x1x1xf32>
    %90 = arith.mulf %80, %80 : vector<1x4x1x1xf32>
    %91 = arith.subf %89, %90 : vector<1x4x1x1xf32>
    %cst_27 = arith.constant 0.000000e+00 : f32
    %92 = vector.broadcast %cst_27 : f32 to vector<1x4x1x1xf32>
    %93 = arith.maximumf %91, %92 : vector<1x4x1x1xf32>
    %c0_28 = arith.constant 0 : index
    %c0_29 = arith.constant 0 : index
    %c0_30 = arith.constant 0 : index
    %94 = vector.load %arg2[%c0_28, %c0_29, %c0_30] : memref<4x1x1xf32, #tpu.memory_space<vmem>>, vector<4x1x1xf32>
    %cst_31 = arith.constant 9.99999974E-6 : f32
    %95 = vector.broadcast %cst_31 : f32 to vector<1x4x1x1xf32>
    %96 = arith.addf %93, %95 : vector<1x4x1x1xf32>
    %97 = math.rsqrt %96 : vector<1x4x1x1xf32>
    %98 = vector.shape_cast %94 : vector<4x1x1xf32> to vector<1x4x1x1xf32>
    %99 = arith.mulf %98, %97 : vector<1x4x1x1xf32>
    %c0_32 = arith.constant 0 : index
    %c0_33 = arith.constant 0 : index
    %c0_34 = arith.constant 0 : index
    %100 = vector.load %arg3[%c0_32, %c0_33, %c0_34] : memref<4x1x1xf32, #tpu.memory_space<vmem>>, vector<4x1x1xf32>
    %101 = arith.mulf %80, %99 : vector<1x4x1x1xf32>
    %102 = vector.shape_cast %100 : vector<4x1x1xf32> to vector<1x4x1x1xf32>
    %103 = arith.subf %102, %101 : vector<1x4x1x1xf32>
    %104 = vector.broadcast %99 : vector<1x4x1x1xf32> to vector<2x4x16x16xf32>
    %105 = arith.mulf %72, %104 : vector<2x4x16x16xf32>
    %106 = vector.broadcast %103 : vector<1x4x1x1xf32> to vector<2x4x16x16xf32>
    %107 = arith.addf %105, %106 : vector<2x4x16x16xf32>
    %cst_35 = arith.constant 0.000000e+00 : f32
    %108 = vector.broadcast %cst_35 : f32 to vector<2x4x16x16xf32>
    %109 = arith.maximumf %107, %108 : vector<2x4x16x16xf32>
    %110 = vector.shape_cast %109 : vector<2x4x16x16xf32> to vector<2x4x256xf32>
    %111 = vector.extract_strided_slice %110 {offsets = [0, 0, 0], sizes = [1, 4, 256], strides = [1, 1, 1]} : vector<2x4x256xf32> to vector<1x4x256xf32>
    %112 = vector.shape_cast %111 : vector<1x4x256xf32> to vector<4x256xf32>
    %113 = vector.extract_strided_slice %110 {offsets = [1, 0, 0], sizes = [1, 4, 256], strides = [1, 1, 1]} : vector<2x4x256xf32> to vector<1x4x256xf32>
    %114 = vector.shape_cast %113 : vector<1x4x256xf32> to vector<4x256xf32>
    %115 = tpu.concatenate %112, %114 in 1 : vector<4x256xf32>, vector<4x256xf32> -> vector<4x512xf32>
    %c0_36 = arith.constant 0 : index
    %c0_37 = arith.constant 0 : index
    %116 = vector.load %arg4[%c0_36, %c0_37] : memref<8x4xf32, #tpu.memory_space<vmem>>, vector<8x4xf32>
    %cst_38 = arith.constant dense<0.000000e+00> : vector<8x512xf32>
    %117 = tpu.matmul %116, %115, %cst_38 {dimension_numbers = #tpu.dot_dimension_numbers<[1], [0], [0], [1], [0, 0, 1, 1], [], []>} : vector<8x4xf32>, vector<4x512xf32>, vector<8x512xf32> -> vector<8x512xf32>
    %cst_39 = arith.constant dense<0.000000e+00> : vector<8xf32>
    %118 = vector.multi_reduction <add>, %117, %cst_39 [1] : vector<8x512xf32> to vector<8xf32>
    %119 = vector.shape_cast %118 : vector<8xf32> to vector<8x1xf32>
    %cst_40 = arith.constant 0.001953125 : f32
    %120 = vector.broadcast %cst_40 : f32 to vector<8x1xf32>
    %121 = arith.mulf %119, %120 : vector<8x1xf32>
    %122 = arith.mulf %117, %117 : vector<8x512xf32>
    %cst_41 = arith.constant dense<0.000000e+00> : vector<8xf32>
    %123 = vector.multi_reduction <add>, %122, %cst_41 [1] : vector<8x512xf32> to vector<8xf32>
    %124 = vector.shape_cast %123 : vector<8xf32> to vector<8x1xf32>
    %cst_42 = arith.constant 0.001953125 : f32
    %125 = vector.broadcast %cst_42 : f32 to vector<8x1xf32>
    %126 = arith.mulf %124, %125 : vector<8x1xf32>
    %127 = arith.mulf %121, %121 : vector<8x1xf32>
    %128 = arith.subf %126, %127 : vector<8x1xf32>
    %cst_43 = arith.constant 0.000000e+00 : f32
    %129 = vector.broadcast %cst_43 : f32 to vector<8x1xf32>
    %130 = arith.maximumf %128, %129 : vector<8x1xf32>
    %c0_44 = arith.constant 0 : index
    %c0_45 = arith.constant 0 : index
    %131 = vector.load %arg5[%c0_44, %c0_45] : memref<8x1xf32, #tpu.memory_space<vmem>>, vector<8x1xf32>
    %cst_46 = arith.constant 9.99999974E-6 : f32
    %132 = vector.broadcast %cst_46 : f32 to vector<8x1xf32>
    %133 = arith.addf %130, %132 : vector<8x1xf32>
    %134 = math.rsqrt %133 : vector<8x1xf32>
    %135 = arith.mulf %131, %134 : vector<8x1xf32>
    %c0_47 = arith.constant 0 : index
    %c0_48 = arith.constant 0 : index
    %136 = vector.load %arg6[%c0_47, %c0_48] : memref<8x1xf32, #tpu.memory_space<vmem>>, vector<8x1xf32>
    %137 = arith.mulf %121, %135 : vector<8x1xf32>
    %138 = arith.subf %136, %137 : vector<8x1xf32>
    %139 = vector.broadcast %135 : vector<8x1xf32> to vector<8x512xf32>
    %140 = arith.mulf %117, %139 : vector<8x512xf32>
    %141 = vector.broadcast %138 : vector<8x1xf32> to vector<8x512xf32>
    %142 = arith.addf %140, %141 : vector<8x512xf32>
    %cst_49 = arith.constant 0.000000e+00 : f32
    %143 = vector.broadcast %cst_49 : f32 to vector<8x512xf32>
    %144 = arith.maximumf %142, %143 : vector<8x512xf32>
    %145 = vector.extract_strided_slice %144 {offsets = [0, 0], sizes = [8, 256], strides = [1, 1]} : vector<8x512xf32> to vector<8x256xf32>
    %c0_50 = arith.constant 0 : index
    %c0_51 = arith.constant 0 : index
    %c0_52 = arith.constant 0 : index
    %146 = vector.load %arg7[%c0_50, %c0_51, %c0_52] : memref<2x8x256xf32, #tpu.memory_space<vmem>>, vector<1x8x256xf32>
    %147 = vector.shape_cast %146 : vector<1x8x256xf32> to vector<8x256xf32>
    %148 = vector.shape_cast %145 : vector<8x256xf32> to vector<1x8x256xf32>
    tpu.vector_store %arg7[%c0_50, %c0_51, %c0_52], %148 {strides = array<i32>} : memref<2x8x256xf32, #tpu.memory_space<vmem>>, vector<1x8x256xf32>,
    %149 = vector.extract_strided_slice %144 {offsets = [0, 256], sizes = [8, 256], strides = [1, 1]} : vector<8x512xf32> to vector<8x256xf32>
    %c1_53 = arith.constant 1 : index
    %c0_54 = arith.constant 0 : index
    %c0_55 = arith.constant 0 : index
    %150 = vector.load %arg7[%c1_53, %c0_54, %c0_55] : memref<2x8x256xf32, #tpu.memory_space<vmem>>, vector<1x8x256xf32>
    %151 = vector.shape_cast %150 : vector<1x8x256xf32> to vector<8x256xf32>
    %152 = vector.shape_cast %149 : vector<8x256xf32> to vector<1x8x256xf32>
    tpu.vector_store %arg7[%c1_53, %c0_54, %c0_55], %152 {strides = array<i32>} : memref<2x8x256xf32, #tpu.memory_space<vmem>>, vector<1x8x256xf32>,
    return
  }
}

</mosaic_0001>

<bundles_post_ra>
// kernel: tpu_custom_call.1
= control target key start
LH: loop header
LB: loop body
LE: loop exit
PB: predicated region body
PF: predicated region fallthrough
CT: control target
= control target key end

     0   :  { %12 = vsyncpa [#allocation4], 0  ;;  %s4315_s0 = inlined_call_operand.hbm [shape: f32[2,4,16,16], index: 0, kind: input, shape index: {}]   ;;  %s4316_s1 = inlined_call_operand.vmem [shape: f32[9,4,1,1], index: 1, kind: input, shape index: {}]   ;;  %s4317_s2 = inlined_call_operand.vmem [shape: f32[4,1,1], index: 2, kind: input, shape index: {}]   ;;  %s4318_s3 = inlined_call_operand.vmem [shape: f32[4,1,1], index: 3, kind: input, shape index: {}]   ;;  %s4319_s4 = inlined_call_operand.vmem [shape: f32[8,4], index: 4, kind: input, shape index: {}]   ;;  %s4320_s5 = inlined_call_operand.vmem [shape: f32[8,1], index: 5, kind: input, shape index: {}]   ;;  %s4321_s6 = inlined_call_operand.vmem [shape: f32[8,1], index: 6, kind: input, shape index: {}]   ;;  %s4322_s7 = inlined_call_operand.hbm [shape: f32[2,8,256], index: 7, kind: output, shape index: {}]  }
   0x1   :  { %13 = vsyncpa [#allocation5], 0  ;;  %s2811_s24 = smov [#allocation3]   ;;  %s2763_s28 = scalar_lea.hbm %s4315_s0, 2048 }
   0x2   :  { %s19_s25 = sshll.u32 %s2811_s24, 4  ;;  %p2764_p0 = scmp.ne.s32.totalorder %s4315_s0, %s2763_s28  ;;  %s20_s25 = int_to_ptr.vmem [resolvable:$true] %s19_s25 }
   0x3   :  { %p2767_p1 = scmp.lt.u32.totalorder %s2763_s28, %s4315_s0 }
   0x5   :  { %p2769_p2 = pnand %p2767_p1, %p2764_p0 }
   0x7   :  { %2772 = shalt.err (!%p2769_p2)
}
   0x8   :  { %s2773_s10 = scalar_lea.vmem %s20_s25, 2048  ;;  %p2778_p4 = scmp.lt.s32.totalorder %s20_s25, %s20_s25 }
   0x9   :  { %p2774_p3 = scmp.ne.s32.totalorder %s20_s25, %s2773_s10  ;;  %p2779_p5 = scmp.lt.s32.totalorder %s2773_s10, %s2773_s10 }
   0xb   :  { %p2780_p6 = por %p2779_p5, %p2778_p4 }
   0xd   :  { %p2781_p7 = pnand %p2780_p6, %p2774_p3 }
   0xf   :  { %2784 = shalt.err (!%p2781_p7)
}
  0x10   :  { %s2812_s11 = smov 128   ;;  %s2813_s12 = smov 8  }
  0x11   :  { %25 = dma.hbm_to_vmem [thread:$0]  %s4315_s0, 2048, %s20_s25, [#allocation4], %s2812_s11, %s2812_s11, %s2813_s12  }
  0x12   :  { %2807 = dma.done.wait [#allocation4], 2048  }
  0x13   :  { %2808 = vsyncadd [#allocation4], 4294965248  ;;  %vm41_vm0 = vcmask 146432   ;;  %v2814_v0 = vmov 0   ;;  %v4323_v1 = vmov 0.0   ;;  %vm44_vm1 = vcmask 140288  }
  0x14   :  { %2733 = vset.pattern.permute.xlu1 %v2814_v0  ;;  %2732 = vset.pattern.permute.xlu0 %v2814_v0  ;;  %46 = vst.msk [vmem:[#allocation2 + $0x18] sm:$0xff] %vm41_vm0, %v4323_v1  ;;  %47 = vst.msk [vmem:[#allocation2 + $0x20] sm:$0xff] %vm41_vm0, %v4323_v1  ;;  %v69_v2 = vld [vmem:[#allocation3 + $0x10] sm:$0xff]  ;;  %v67_v3 = vld [vmem:[#allocation3] sm:$0xff]  ;;  %s2816_s0 = smov 1   ;;  %vm147_vm2 = vcmask 138248  }
  0x15   :  { %42 = vst.msk [vmem:[#allocation2] sm:$0xff] %vm41_vm0, %v4323_v1  ;;  %43 = vst.msk [vmem:[#allocation2 + $0x8] sm:$0xff] %vm41_vm0, %v4323_v1  ;;  %2523 = vmatprep.mubr.f32.mxu0 %v4323_v1  ;;  %2594 = vmatprep.mubr.f32.mxu1 %v4323_v1  ;;  %v70_v4 = vld [vmem:[#allocation3 + $0x18] sm:$0xff]  ;;  %v68_v5 = vld [vmem:[#allocation3 + $0x8] sm:$0xff]  ;;  %vm376_vm3 = vcmask 1046528   ;;  %vm533_vm4 = vcmask 1045504  }
  0x16   :  { %49 = vst.msk [vmem:[#allocation2 + $0x30] sm:$0xff] %vm41_vm0, %v4323_v1  ;;  %50 = vst.msk [vmem:[#allocation2 + $0x38] sm:$0xff] %vm41_vm0, %v4323_v1  ;;  %103 = vrot.lane.b32.xlu1 %v69_v2, %s2816_s0  ;;  %99 = vrot.lane.b32.xlu0 %v67_v3, %s2816_s0  ;;  %v72_v6 = vld [vmem:[#allocation3 + $0x28] sm:$0xff]  ;;  %v71_v7 = vld [vmem:[#allocation3 + $0x20] sm:$0xff]  ;;  %s2818_s15 = smov 126   ;;  %vm1622_vm5 = vcmask 130048  }
  0x17   :  { %52 = vst.msk [vmem:[#allocation2 + $0x48] sm:$0xff] %vm41_vm0, %v4323_v1  ;;  %53 = vst.msk [vmem:[#allocation2 + $0x50] sm:$0xff] %vm41_vm0, %v4323_v1  ;;  %v74_v8 = vld [vmem:[#allocation3 + $0x38] sm:$0xff]  ;;  %v73_v9 = vld [vmem:[#allocation3 + $0x30] sm:$0xff]  ;;  %s2822_s8 = smov 64   ;;  %s2823_s9 = smov 96  }
  0x18   :  { %55 = vst.msk [vmem:[#allocation2 + $0x60] sm:$0xff] %vm41_vm0, %v4323_v1  ;;  %56 = vst.msk [vmem:[#allocation2 + $0x68] sm:$0xff] %vm41_vm0, %v4323_v1  ;;  %v76_v10 = vld [vmem:[#allocation3 + $0x48] sm:$0xff]  ;;  %v75_v11 = vld [vmem:[#allocation3 + $0x40] sm:$0xff]  ;;  %s2824_s10 = smov 16   ;;  %s2825_s11 = smov 48  }
  0x19   :  { %58 = vst.msk [vmem:[#allocation2 + $0x78] sm:$0xff] %vm41_vm0, %v4323_v1  ;;  %59 = vst.msk [vmem:[#allocation2 + $0x80] sm:$0xff] %vm41_vm0, %v4323_v1  ;;  %v78_v12 = vld [vmem:[#allocation3 + $0x58] sm:$0xff]  ;;  %v77_v13 = vld [vmem:[#allocation3 + $0x50] sm:$0xff]  ;;  %s2826_s12 = smov 80   ;;  %s2827_s13 = smov 112  }
  0x1a   :  { %61 = vst.msk [vmem:[#allocation2 + $0x90] sm:$0xff] %vm41_vm0, %v4323_v1  ;;  %62 = vst.msk [vmem:[#allocation2 + $0x98] sm:$0xff] %vm41_vm0, %v4323_v1  ;;  %105 = vrot.lane.b32.xlu1 %v70_v4, %s2816_s0  ;;  %101 = vrot.lane.b32.xlu0 %v68_v5, %s2816_s0  ;;  %v80_v14 = vld [vmem:[#allocation3 + $0x68] sm:$0xff]  ;;  %v79_v15 = vld [vmem:[#allocation3 + $0x60] sm:$0xff]  ;;  %vm2409_vm6 = vcmask 261120   ;;  %vm2412_vm7 = vcmask 392192  }
  0x1b   :  { %64 = vst.msk [vmem:[#allocation2 + $0xa8] sm:$0xff] %vm41_vm0, %v4323_v1  ;;  %65 = vst.msk [vmem:[#allocation2 + $0xb0] sm:$0xff] %vm41_vm0, %v4323_v1  ;;  %v82_v16 = vld [vmem:[#allocation3 + $0x78] sm:$0xff]  ;;  %v81_v17 = vld [vmem:[#allocation3 + $0x70] sm:$0xff]  ;;  %vm2415_vm8 = vcmask 523264   ;;  %vm2418_vm9 = vcmask 654336  }
  0x1c   :  { %48 = vst.msk [vmem:[#allocation2 + $0x28] sm:$0x3] %vm44_vm1, %v4323_v1  ;;  %45 = vst.msk [vmem:[#allocation2 + $0x10] sm:$0x3] %vm44_vm1, %v4323_v1  ;;  %v2688_v18 = vld [vmem:[%s4316_s1 + $0x11] ss:$0 sm:$0xff] }
  0x1d   :  { %51 = vst.msk [vmem:[#allocation2 + $0x40] sm:$0x3] %vm44_vm1, %v4323_v1  ;;  %54 = vst.msk [vmem:[#allocation2 + $0x58] sm:$0x3] %vm44_vm1, %v4323_v1  ;;  %v2687_v19 = vld [vmem:[%s4316_s1 + $0x10] ss:$0 sm:$0xff] }
  0x1e   :  { %57 = vst.msk [vmem:[#allocation2 + $0x70] sm:$0x3] %vm44_vm1, %v4323_v1  ;;  %60 = vst.msk [vmem:[#allocation2 + $0x88] sm:$0x3] %vm44_vm1, %v4323_v1  ;;  %109 = vrot.lane.b32.xlu1 %v72_v6, %s2816_s0  ;;  %107 = vrot.lane.b32.xlu0 %v71_v7, %s2816_s0  ;;  %v2689_v20 = vld [vmem:[%s4316_s1 + $0x12] ss:$0 sm:$0xff] }
  0x1f   :  { %63 = vst.msk [vmem:[#allocation2 + $0xa0] sm:$0x3] %vm44_vm1, %v4323_v1  ;;  %66 = vst.msk [vmem:[#allocation2 + $0xb8] sm:$0x3] %vm44_vm1, %v4323_v1  ;;  %v2690_v21 = vld [vmem:[%s4316_s1 + $0x13] ss:$0 sm:$0xff] }
  0x20   :  { %v2683_v22 = vld [vmem:[%s4316_s1 + $0x4] ss:$0 sm:$0xff]  ;;  %v2684_v23 = vld [vmem:[%s4316_s1 + $0x5] ss:$0 sm:$0xff]  ;;  %v2685_v24 = vld [vmem:[%s4316_s1 + $0x6] ss:$0 sm:$0xff] }
  0x21   :  { %v2686_v25 = vld [vmem:[%s4316_s1 + $0x7] ss:$0 sm:$0xff]  ;;  %v2691_v26 = vld [vmem:[%s4316_s1 + $0x1c] ss:$0 sm:$0xff]  ;;  %v2692_v27 = vld [vmem:[%s4316_s1 + $0x1d] ss:$0 sm:$0xff] }
  0x22   :  { %113 = vrot.lane.b32.xlu1 %v74_v8, %s2816_s0  ;;  %111 = vrot.lane.b32.xlu0 %v73_v9, %s2816_s0  ;;  %v2693_v28 = vld [vmem:[%s4316_s1 + $0x1e] ss:$0 sm:$0xff]  ;;  %v2694_v29 = vld [vmem:[%s4316_s1 + $0x1f] ss:$0 sm:$0xff]  ;;  %vm2421_vm10 = vcmask 785408   ;;  %vm2424_vm11 = vcmask 916480  }
  0x23   :  { %v2699_v30 = vld [vmem:[%s4316_s1 + $0x14] ss:$0 sm:$0xff]  ;;  %v2700_v31 = vld [vmem:[%s4316_s1 + $0x15] ss:$0 sm:$0xff]  ;;  %v2701_v32 = vld [vmem:[%s4316_s1 + $0x16] ss:$0 sm:$0xff] }
  0x24   :  { %v2702_v33 = vld [vmem:[%s4316_s1 + $0x17] ss:$0 sm:$0xff]  ;;  %v2695_v34 = vld [vmem:[%s4316_s1 + $0x8] ss:$0 sm:$0xff]  ;;  %v2696_v35 = vld [vmem:[%s4316_s1 + $0x9] ss:$0 sm:$0xff] }
  0x25   :  { %v2697_v36 = vld [vmem:[%s4316_s1 + $0xa] ss:$0 sm:$0xff]  ;;  %v2698_v37 = vld [vmem:[%s4316_s1 + $0xb] ss:$0 sm:$0xff]  ;;  %v2703_v38 = vld [vmem:[%s4316_s1 + $0x20] ss:$0 sm:$0xff] }
  0x26   :  { %117 = vrot.lane.b32.xlu1 %v76_v10, %s2816_s0  ;;  %115 = vrot.lane.b32.xlu0 %v75_v11, %s2816_s0  ;;  %v2704_v39 = vld [vmem:[%s4316_s1 + $0x21] ss:$0 sm:$0xff]  ;;  %v2705_v40 = vld [vmem:[%s4316_s1 + $0x22] ss:$0 sm:$0xff]  ;;  %vm2446_vm12 = vcmask 1043456   ;;  %vm2442_vm13 = vcmask 31744  }
  0x27   :  { %v2706_v41 = vld [vmem:[%s4316_s1 + $0x23] ss:$0 sm:$0xff]  ;;  %v2675_v42 = vld [vmem:[%s4316_s1 + $0xc] ss:$0 sm:$0xff]  ;;  %v2676_v43 = vld [vmem:[%s4316_s1 + $0xd] ss:$0 sm:$0xff] }
  0x28   :  { %v2677_v44 = vld [vmem:[%s4316_s1 + $0xe] ss:$0 sm:$0xff]  ;;  %v2678_v45 = vld [vmem:[%s4316_s1 + $0xf] ss:$0 sm:$0xff]  ;;  %v2679_v46 = vld [vmem:[%s4316_s1 + $0x18] ss:$0 sm:$0xff] }
  0x29   :  { %v2680_v47 = vld [vmem:[%s4316_s1 + $0x19] ss:$0 sm:$0xff]  ;;  %v2681_v48 = vld [vmem:[%s4316_s1 + $0x1a] ss:$0 sm:$0xff]  ;;  %v2682_v49 = vld [vmem:[%s4316_s1 + $0x1b] ss:$0 sm:$0xff] }
  0x2a   :  { %121 = vrot.lane.b32.xlu1 %v78_v12, %s2816_s0  ;;  %119 = vrot.lane.b32.xlu0 %v77_v13, %s2816_s0  ;;  %v2671_v50 = vld [vmem:[%s4316_s1] ss:$0 sm:$0xff]  ;;  %v2672_v51 = vld [vmem:[%s4316_s1 + $0x1] ss:$0 sm:$0xff]  ;;  %s2828_s17 = smov [#allocation6]  }
  0x2b   :  { %v2673_v52 = vld [vmem:[%s4316_s1 + $0x2] ss:$0 sm:$0xff]  ;;  %v2674_v53 = vld [vmem:[%s4316_s1 + $0x3] ss:$0 sm:$0xff]  ;;  %s2817_s1 = smov 127   ;;  %s2659_s18 = sshll.u32 %s2828_s17, 4  ;;  %s2660_s18 = int_to_ptr.vmem [resolvable:$true] %s2659_s18 }
  0x2c   :  { %p2790_p9 = scmp.lt.s32.totalorder %s2660_s18, %s2660_s18 }
  0x2e   :  { %125 = vrot.lane.b32.xlu1 %v80_v14, %s2816_s0  ;;  %123 = vrot.lane.b32.xlu0 %v79_v15, %s2816_s0 }
  0x32   :  { %129 = vrot.lane.b32.xlu1 %v82_v16, %s2816_s0  ;;  %127 = vrot.lane.b32.xlu0 %v81_v17, %s2816_s0 }
  0x36   :  { %763 = vperm.xlu1 %2733, %v2688_v18   ;;  %759 = vperm.xlu0 %2732, %v2687_v19  }
  0x3a   :  { %767 = vperm.xlu1 %2733, %v2689_v20   ;;  %771 = vperm.xlu0 %2732, %v2690_v21  }
  0x3e   :  { %627 = vperm.xlu1 %2733, %v2683_v22   ;;  %631 = vperm.xlu0 %2732, %v2684_v23  }
  0x42   :  { %635 = vperm.xlu1 %2733, %v2685_v24   ;;  %639 = vperm.xlu0 %2732, %v2686_v25  }
  0x46   :  { %947 = vperm.xlu1 %2733, %v2691_v26   ;;  %951 = vperm.xlu0 %2732, %v2692_v27  }
  0x4a   :  { %955 = vperm.xlu1 %2733, %v2693_v28   ;;  %959 = vperm.xlu0 %2732, %v2694_v29  }
  0x4e   :  { %1267 = vperm.xlu1 %2733, %v2699_v30   ;;  %1271 = vperm.xlu0 %2732, %v2700_v31  }
  0x52   :  { %1275 = vperm.xlu1 %2733, %v2701_v32   ;;  %1279 = vperm.xlu0 %2732, %v2702_v33  }
  0x56   :  { %1135 = vperm.xlu1 %2733, %v2695_v34   ;;  %1139 = vperm.xlu0 %2732, %v2696_v35  }
  0x5a   :  { %1143 = vperm.xlu1 %2733, %v2697_v36   ;;  %1147 = vperm.xlu0 %2732, %v2698_v37  }
  0x5e   :  { %1455 = vperm.xlu1 %2733, %v2703_v38   ;;  %1459 = vperm.xlu0 %2732, %v2704_v39  }
  0x62   :  { %1463 = vperm.xlu1 %2733, %v2705_v40   ;;  %1467 = vperm.xlu0 %2732, %v2706_v41  }
  0x66   :  { %313 = vperm.xlu1 %2733, %v2675_v42   ;;  %317 = vperm.xlu0 %2732, %v2676_v43  }
  0x6a   :  { %321 = vperm.xlu1 %2733, %v2677_v44   ;;  %325 = vperm.xlu0 %2732, %v2678_v45  }
  0x6e   :  { %470 = vperm.xlu1 %2733, %v2679_v46   ;;  %474 = vperm.xlu0 %2732, %v2680_v47  }
  0x72   :  { %478 = vperm.xlu1 %2733, %v2681_v48   ;;  %482 = vperm.xlu0 %2732, %v2682_v49  }
  0x76   :  { %245 = vperm.xlu1 %2733, %v2671_v50   ;;  %249 = vperm.xlu0 %2732, %v2672_v51  }
  0x7a   :  { %253 = vperm.xlu1 %2733, %v2673_v52   ;;  %257 = vperm.xlu0 %2732, %v2674_v53  }
  0x88   :  { %v104_v54 = vpop.permute.xlu1 %103  ;;  %v100_v55 = vpop.permute.xlu0 %99 }
  0x89   :  { %150 = vst.msk [vmem:[#allocation2 + $0x19] sm:$0xff] %vm147_vm2, %v104_v54  ;;  %148 = vst.msk [vmem:[#allocation2 + $0x1] sm:$0xff] %vm147_vm2, %v100_v55 }
  0x8c   :  { %v106_v56 = vpop.permute.xlu1 %105  ;;  %v102_v57 = vpop.permute.xlu0 %101 }
  0x8d   :  { %151 = vst.msk [vmem:[#allocation2 + $0x21] sm:$0xff] %vm147_vm2, %v106_v56  ;;  %149 = vst.msk [vmem:[#allocation2 + $0x9] sm:$0xff] %vm147_vm2, %v102_v57 }
  0x90   :  { %v110_v58 = vpop.permute.xlu1 %109  ;;  %v108_v59 = vpop.permute.xlu0 %107  ;;  %v3058_v13 = vld [vmem:[#allocation2] sm:$0xff]  ;;  %v3066_v18 = vld [vmem:[#allocation2 + $0x18] sm:$0xff] }
  0x91   :  { %153 = vst.msk [vmem:[#allocation2 + $0x39] sm:$0xff] %vm147_vm2, %v110_v58  ;;  %152 = vst.msk [vmem:[#allocation2 + $0x31] sm:$0xff] %vm147_vm2, %v108_v59 }
  0x94   :  { %v114_v60 = vpop.permute.xlu1 %113  ;;  %v112_v61 = vpop.permute.xlu0 %111  ;;  %v3056_v12 = vld [vmem:[#allocation2 + $0x8] sm:$0xff]  ;;  %v3064_v17 = vld [vmem:[#allocation2 + $0x20] sm:$0xff]  ;;  %v3110_v43 = vld [vmem:[#allocation2 + $0x10] sm:$0x3] }
  0x95   :  { %155 = vst.msk [vmem:[#allocation2 + $0x51] sm:$0xff] %vm147_vm2, %v114_v60  ;;  %154 = vst.msk [vmem:[#allocation2 + $0x49] sm:$0xff] %vm147_vm2, %v112_v61  ;;  %v3124_v49 = vld [vmem:[#allocation2 + $0x28] sm:$0x3] }
  0x98   :  { %v118_v62 = vpop.permute.xlu1 %117  ;;  %v116_v63 = vpop.permute.xlu0 %115  ;;  %v3072_v22 = vld [vmem:[#allocation2 + $0x38] sm:$0xff]  ;;  %v3074_v23 = vld [vmem:[#allocation2 + $0x30] sm:$0xff]  ;;  %v3136_v61 = vld [vmem:[#allocation2 + $0x40] sm:$0x3] }
  0x99   :  { %157 = vst.msk [vmem:[#allocation2 + $0x69] sm:$0xff] %vm147_vm2, %v118_v62  ;;  %156 = vst.msk [vmem:[#allocation2 + $0x61] sm:$0xff] %vm147_vm2, %v116_v63 }
  0x9c   :  { %v122_v0 = vpop.permute.xlu1 %121  ;;  %v120_v2 = vpop.permute.xlu0 %119  ;;  %v3080_v27 = vld [vmem:[#allocation2 + $0x50] sm:$0xff]  ;;  %v3082_v28 = vld [vmem:[#allocation2 + $0x48] sm:$0xff] }
  0x9d   :  { %159 = vst.msk [vmem:[#allocation2 + $0x81] sm:$0xff] %vm147_vm2, %v122_v0  ;;  %158 = vst.msk [vmem:[#allocation2 + $0x79] sm:$0xff] %vm147_vm2, %v120_v2 }
  0xa0   :  { %v126_v3 = vpop.permute.xlu1 %125  ;;  %v124_v4 = vpop.permute.xlu0 %123  ;;  %v3088_v31 = vld [vmem:[#allocation2 + $0x68] sm:$0xff]  ;;  %v3090_v32 = vld [vmem:[#allocation2 + $0x60] sm:$0xff] }
  0xa1   :  { %161 = vst.msk [vmem:[#allocation2 + $0x99] sm:$0xff] %vm147_vm2, %v126_v3  ;;  %160 = vst.msk [vmem:[#allocation2 + $0x91] sm:$0xff] %vm147_vm2, %v124_v4 }
  0xa4   :  { %v130_v5 = vpop.permute.xlu1 %129  ;;  %v128_v6 = vpop.permute.xlu0 %127  ;;  %v3096_v35 = vld [vmem:[#allocation2 + $0x80] sm:$0xff]  ;;  %v3098_v36 = vld [vmem:[#allocation2 + $0x78] sm:$0xff] }
  0xa5   :  { %163 = vst.msk [vmem:[#allocation2 + $0xb1] sm:$0xff] %vm147_vm2, %v130_v5  ;;  %162 = vst.msk [vmem:[#allocation2 + $0xa9] sm:$0xff] %vm147_vm2, %v128_v6 }
  0xa8   :  { %v3104_v39 = vld [vmem:[#allocation2 + $0x98] sm:$0xff]  ;;  %v3106_v40 = vld [vmem:[#allocation2 + $0x90] sm:$0xff] }
  0xac   :  { %v3120_v47 = vld [vmem:[#allocation2 + $0xb0] sm:$0xff]  ;;  %v3122_v48 = vld [vmem:[#allocation2 + $0xa8] sm:$0xff] }
  0xb5   :  { %v3048_v7 = vpop.permute.xlu1 %763  ;;  %v3050_v8 = vpop.permute.xlu0 %759 }
  0xb6   :  { %v775_v44 = vmul.f32 %v3050_v8, %v3056_v12  ;;  %v776_v45 = vmul.f32 %v3050_v8, %v3110_v43  ;;  %v774_v46 = vmul.f32 %v3050_v8, %v3058_v13  ;;  %v778_v50 = vmul.f32 %v3048_v7, %v3064_v17 }
  0xb7   :  { %v779_v53 = vmul.f32 %v3048_v7, %v3124_v49  ;;  %v777_v54 = vmul.f32 %v3048_v7, %v3066_v18 }
  0xb8   :  { %v823_v55 = vrot.slane %v775_v44, 1  ;;  %v825_v56 = vrot.slane %v776_v45, 1  ;;  %v822_v57 = vrot.slane %v774_v46, 1  ;;  %v828_v58 = vrot.slane %v778_v50, 1  ;;  %v3180_v46 = vld [vmem:[#allocation2 + $0x88] sm:$0x3] }
  0xb9   :  { %v3052_v9 = vpop.permute.xlu1 %767  ;;  %v3054_v10 = vpop.permute.xlu0 %771  ;;  %v830_v59 = vrot.slane %v779_v53, 1  ;;  %v827_v60 = vrot.slane %v777_v54, 1 }
  0xba   :  { %v781_v62 = vmul.f32 %v3052_v9, %v3072_v22  ;;  %v826_v63 = vsel %vm376_vm3, %v823_v55, %v825_v56  ;;  %v824_v0 = vsel %vm376_vm3, %v822_v57, %v823_v55  ;;  %v782_v2 = vmul.f32 %v3052_v9, %v3136_v61 }
  0xbb   :  { %v780_v3 = vmul.f32 %v3052_v9, %v3074_v23  ;;  %v831_v6 = vsel %vm376_vm3, %v828_v58, %v830_v59  ;;  %v789_v55 = vmul.f32 %v3048_v7, %v3098_v36 }
  0xbd   :  { %v628_v11 = vpop.permute.xlu1 %627  ;;  %v632_v16 = vpop.permute.xlu0 %631 }
  0xbe   :  { %v643_v14 = vmul.f32 %v628_v11, %v3056_v12  ;;  %v642_v15 = vmul.f32 %v628_v11, %v3058_v13  ;;  %v645_v19 = vmul.f32 %v632_v16, %v3064_v17  ;;  %v644_v20 = vmul.f32 %v632_v16, %v3066_v18 }
  0xbf   :  { %v651_v33 = vmul.f32 %v628_v11, %v3088_v31  ;;  %v650_v34 = vmul.f32 %v628_v11, %v3090_v32  ;;  %v653_v37 = vmul.f32 %v632_v16, %v3096_v35  ;;  %v652_v38 = vmul.f32 %v632_v16, %v3098_v36 }
  0xc0   :  { %676 = vrot.lane.b32.xlu0 %v643_v14, %s2817_s1  ;;  %674 = vrot.lane.b32.xlu1 %v642_v15, %s2817_s1  ;;  %v829_v11 = vsel %vm376_vm3, %v827_v60, %v828_v58  ;;  %v833_v14 = vrot.slane %v781_v62, 1  ;;  %v3154_v15 = vld [vmem:[#allocation2 + $0x58] sm:$0x3]  ;;  %v784_v16 = vmul.f32 %v3054_v10, %v3080_v27 }
  0xc1   :  { %v636_v21 = vpop.permute.xlu1 %635  ;;  %v640_v26 = vpop.permute.xlu0 %639 }
  0xc2   :  { %v647_v24 = vmul.f32 %v636_v21, %v3072_v22  ;;  %v646_v25 = vmul.f32 %v636_v21, %v3074_v23  ;;  %v649_v29 = vmul.f32 %v640_v26, %v3080_v27  ;;  %v648_v30 = vmul.f32 %v640_v26, %v3082_v28 }
  0xc3   :  { %v655_v41 = vmul.f32 %v636_v21, %v3104_v39  ;;  %v654_v42 = vmul.f32 %v636_v21, %v3106_v40  ;;  %v657_v51 = vmul.f32 %v640_v26, %v3120_v47  ;;  %v656_v52 = vmul.f32 %v640_v26, %v3122_v48 }
  0xc4   :  { %680 = vrot.lane.b32.xlu0 %v645_v19, %s2817_s1  ;;  %678 = vrot.lane.b32.xlu1 %v644_v20, %s2817_s1  ;;  %v835_v19 = vrot.slane %v782_v2, 1  ;;  %v832_v20 = vrot.slane %v780_v3, 1  ;;  %v785_v21 = vmul.f32 %v3054_v10, %v3154_v15  ;;  %v787_v26 = vmul.f32 %v3050_v8, %v3088_v31 }
  0xc5   :  { %v3146_v4 = vpop.permute.xlu1 %947  ;;  %v3148_v5 = vpop.permute.xlu0 %951  ;;  %v792_v3 = vmul.f32 %v3052_v9, %v3106_v40 }
  0xc6   :  { %v843_v45 = vrot.slane %v787_v26, 1 }
  0xc8   :  { %684 = vrot.lane.b32.xlu0 %v647_v24, %s2817_s1  ;;  %682 = vrot.lane.b32.xlu1 %v646_v25, %s2817_s1  ;;  %v783_v24 = vmul.f32 %v3054_v10, %v3082_v28  ;;  %v3164_v25 = vld [vmem:[#allocation2 + $0x70] sm:$0x3] }
  0xca   :  { %v837_v44 = vrot.slane %v783_v24, 1 }
  0xcc   :  { %688 = vrot.lane.b32.xlu0 %v649_v29, %s2817_s1  ;;  %686 = vrot.lane.b32.xlu1 %v648_v30, %s2817_s1  ;;  %v3168_v29 = vpop.permute.xlu1 %955  ;;  %v3170_v30 = vpop.permute.xlu0 %959 }
  0xd0   :  { %692 = vrot.lane.b32.xlu0 %v651_v33, %s2817_s1  ;;  %690 = vrot.lane.b32.xlu1 %v650_v34, %s2817_s1  ;;  %v838_v33 = vrot.slane %v784_v16, 1  ;;  %v788_v34 = vmul.f32 %v3050_v8, %v3164_v25  ;;  %v3190_v56 = vpop.permute.xlu1 %1267  ;;  %v3192_v57 = vpop.permute.xlu0 %1271 }
  0xd2   :  { %v845_v50 = vrot.slane %v788_v34, 1  ;;  %v839_v54 = vsel %vm376_vm3, %v837_v44, %v838_v33 }
  0xd4   :  { %696 = vrot.lane.b32.xlu0 %v653_v37, %s2817_s1  ;;  %694 = vrot.lane.b32.xlu1 %v652_v38, %s2817_s1  ;;  %v786_v37 = vmul.f32 %v3050_v8, %v3090_v32  ;;  %v836_v38 = vsel %vm376_vm3, %v833_v14, %v835_v19  ;;  %v791_v8 = vmul.f32 %v3048_v7, %v3180_v46 }
  0xd5   :  { %v846_v58 = vsel %vm376_vm3, %v843_v45, %v845_v50  ;;  %v796_v19 = vmul.f32 %v3054_v10, %v3120_v47 }
  0xd6   :  { %v850_v62 = vrot.slane %v791_v8, 1 }
  0xd7   :  { %v858_v34 = vrot.slane %v796_v19, 1 }
  0xd8   :  { %700 = vrot.lane.b32.xlu0 %v655_v41, %s2817_s1  ;;  %698 = vrot.lane.b32.xlu1 %v654_v42, %s2817_s1  ;;  %v834_v41 = vsel %vm376_vm3, %v832_v20, %v833_v14  ;;  %v840_v42 = vrot.slane %v785_v21, 1  ;;  %v3212_v14 = vpop.permute.xlu0 %1279 }
  0xda   :  { %v841_v53 = vsel %vm376_vm3, %v838_v33, %v840_v42  ;;  %v852_v33 = vrot.slane %v792_v3, 1  ;;  %v970_v3 = vmul.f32 %v3168_v29, %v3136_v61 }
  0xdc   :  { %704 = vrot.lane.b32.xlu0 %v657_v51, %s2817_s1  ;;  %702 = vrot.lane.b32.xlu1 %v656_v52, %s2817_s1  ;;  %v842_v51 = vrot.slane %v786_v37, 1  ;;  %v790_v52 = vmul.f32 %v3048_v7, %v3096_v35  ;;  %v793_v7 = vmul.f32 %v3052_v9, %v3104_v39 }
  0xde   :  { %v844_v59 = vsel %vm376_vm3, %v842_v51, %v843_v45  ;;  %v848_v60 = vrot.slane %v790_v52, 1  ;;  %v853_v24 = vrot.slane %v793_v7, 1  ;;  %v962_v45 = vmul.f32 %v3146_v4, %v3058_v13  ;;  %v3234_v51 = vpop.permute.xlu0 %1139 }
  0xe0   :  { %864 = vrot.lane.b32.xlu0 %v826_v63, %s2817_s1  ;;  %862 = vrot.lane.b32.xlu1 %v824_v0, %s2817_s1  ;;  %v3198_v63 = vld [vmem:[#allocation2 + $0xa0] sm:$0x3]  ;;  %v847_v0 = vrot.slane %v789_v55, 1  ;;  %v851_v16 = vsel %vm376_vm3, %v848_v60, %v850_v62  ;;  %v854_v44 = vsel %vm376_vm3, %v852_v33, %v853_v24 }
  0xe1   :  { %v794_v2 = vmul.f32 %v3052_v9, %v3198_v63  ;;  %v795_v9 = vmul.f32 %v3054_v10, %v3122_v48 }
  0xe2   :  { %v849_v21 = vsel %vm376_vm3, %v847_v0, %v848_v60  ;;  %v965_v60 = vmul.f32 %v3148_v5, %v3066_v18  ;;  %v3250_v0 = vpop.permute.xlu0 %1147 }
  0xe3   :  { %v855_v26 = vrot.slane %v794_v2, 1  ;;  %v969_v2 = vmul.f32 %v3168_v29, %v3072_v22 }
  0xe4   :  { %868 = vrot.lane.b32.xlu0 %v831_v6, %s2817_s1  ;;  %866 = vrot.lane.b32.xlu1 %v829_v11, %s2817_s1  ;;  %v3208_v6 = vld [vmem:[#allocation2 + $0xb8] sm:$0x3]  ;;  %v3210_v11 = vpop.permute.xlu1 %1275 }
  0xe5   :  { %v797_v20 = vmul.f32 %v3054_v10, %v3208_v6  ;;  %v856_v42 = vsel %vm376_vm3, %v853_v24, %v855_v26  ;;  %v964_v10 = vmul.f32 %v3146_v4, %v3110_v43  ;;  %v1021_v24 = vrot.slane %v969_v2, 2 }
  0xe6   :  { %v1023_v26 = vrot.slane %v970_v3, 2  ;;  %v978_v3 = vmul.f32 %v3148_v5, %v3096_v35 }
  0xe7   :  { %v860_v37 = vrot.slane %v797_v20, 1  ;;  %v1013_v55 = vrot.slane %v964_v10, 2  ;;  %v3272_v10 = vpop.permute.xlu0 %1459 }
  0xe8   :  { %872 = vrot.lane.b32.xlu0 %v836_v38, %s2817_s1  ;;  %870 = vrot.lane.b32.xlu1 %v834_v41, %s2817_s1  ;;  %v857_v38 = vrot.slane %v795_v9, 1  ;;  %v963_v41 = vmul.f32 %v3146_v4, %v3056_v12  ;;  %v3232_v50 = vpop.permute.xlu1 %1135 }
  0xe9   :  { %v861_v52 = vsel %vm376_vm3, %v858_v34, %v860_v37 }
  0xea   :  { %v859_v8 = vsel %vm376_vm3, %v857_v38, %v858_v34  ;;  %v972_v34 = vmul.f32 %v3170_v30, %v3080_v27 }
  0xec   :  { %876 = vrot.lane.b32.xlu0 %v841_v53, %s2817_s1  ;;  %874 = vrot.lane.b32.xlu1 %v839_v54, %s2817_s1  ;;  %v1011_v53 = vrot.slane %v963_v41, 2  ;;  %v966_v54 = vmul.f32 %v3148_v5, %v3064_v17  ;;  %v3248_v62 = vpop.permute.xlu1 %1143  ;;  %v973_v41 = vmul.f32 %v3170_v30, %v3154_v15 }
  0xee   :  { %v1016_v7 = vrot.slane %v966_v54, 2  ;;  %v1014_v19 = vsel %vm533_vm4, %v1011_v53, %v1013_v55  ;;  %v1028_v54 = vrot.slane %v973_v41, 2  ;;  %v980_v41 = vmul.f32 %v3168_v29, %v3106_v40 }
  0xf0   :  { %880 = vrot.lane.b32.xlu0 %v846_v58, %s2817_s1  ;;  %878 = vrot.lane.b32.xlu1 %v844_v59, %s2817_s1  ;;  %v1010_v58 = vrot.slane %v962_v45, 2  ;;  %v967_v59 = vmul.f32 %v3148_v5, %v3124_v49  ;;  %v1024_v45 = vsel %vm533_vm4, %v1021_v24, %v1023_v26 }
  0xf2   :  { %v1012_v20 = vsel %vm533_vm4, %v1010_v58, %v1011_v53  ;;  %v1018_v9 = vrot.slane %v967_v59, 2  ;;  %v975_v53 = vmul.f32 %v3146_v4, %v3088_v31  ;;  %v976_v58 = vmul.f32 %v3146_v4, %v3164_v25 }
  0xf3   :  { %v974_v59 = vmul.f32 %v3146_v4, %v3090_v32 }
  0xf4   :  { %884 = vrot.lane.b32.xlu0 %v851_v16, %s2817_s1  ;;  %882 = vrot.lane.b32.xlu1 %v849_v21, %s2817_s1  ;;  %v968_v16 = vmul.f32 %v3168_v29, %v3074_v23  ;;  %v1015_v21 = vrot.slane %v965_v60, 2  ;;  %v1019_v37 = vsel %vm533_vm4, %v1016_v7, %v1018_v9  ;;  %v1031_v2 = vrot.slane %v975_v53, 2 }
  0xf5   :  { %v1033_v9 = vrot.slane %v976_v58, 2  ;;  %v1040_v58 = vrot.slane %v980_v41, 2  ;;  %v1152_v41 = vmul.f32 %v3234_v51, %v3066_v18 }
  0xf6   :  { %v1020_v33 = vrot.slane %v968_v16, 2  ;;  %v1017_v38 = vsel %vm533_vm4, %v1015_v21, %v1016_v7  ;;  %v3288_v7 = vpop.permute.xlu0 %1467  ;;  %v979_v16 = vmul.f32 %v3148_v5, %v3180_v46  ;;  %v1030_v21 = vrot.slane %v974_v59, 2 }
  0xf7   :  { %v983_v59 = vmul.f32 %v3170_v30, %v3122_v48 }
  0xf8   :  { %888 = vrot.lane.b32.xlu0 %v856_v42, %s2817_s1  ;;  %886 = vrot.lane.b32.xlu1 %v854_v44, %s2817_s1  ;;  %v971_v42 = vmul.f32 %v3170_v30, %v3082_v28  ;;  %v3270_v44 = vpop.permute.xlu1 %1455  ;;  %v1038_v26 = vrot.slane %v979_v16, 2 }
  0xfa   :  { %v1025_v55 = vrot.slane %v971_v42, 2 }
  0xfc   :  { %892 = vrot.lane.b32.xlu0 %v861_v52, %s2817_s1  ;;  %890 = vrot.lane.b32.xlu1 %v859_v8, %s2817_s1  ;;  %v1022_v52 = vsel %vm533_vm4, %v1020_v33, %v1021_v24  ;;  %v1026_v8 = vrot.slane %v972_v34, 2  ;;  %v3286_v60 = vpop.permute.xlu1 %1463  ;;  %v1036_v24 = vrot.slane %v978_v3, 2  ;;  %v981_v34 = vmul.f32 %v3168_v29, %v3104_v39 }
  0xfe   :  { %v1029_v4 = vsel %vm533_vm4, %v1026_v8, %v1028_v54  ;;  %v1041_v53 = vrot.slane %v981_v34, 2  ;;  %v984_v54 = vmul.f32 %v3170_v30, %v3120_v47  ;;  %v1150_v34 = vmul.f32 %v3232_v50, %v3058_v13 }
 0x100   :  { %1052 = vrot.lane.b32.xlu0 %v1014_v19, %s2817_s1  ;;  %1050 = vrot.lane.b32.xlu1 %v1012_v20, %s2817_s1  ;;  %v977_v19 = vmul.f32 %v3148_v5, %v3098_v36  ;;  %v1027_v20 = vsel %vm533_vm4, %v1025_v55, %v1026_v8  ;;  %v1032_v5 = vsel %vm533_vm4, %v1030_v21, %v1031_v2  ;;  %v3308_v42 = vpop.permute.xlu1 %313  ;;  %v1046_v16 = vrot.slane %v984_v54, 2 }
 0x102   :  { %v1035_v33 = vrot.slane %v977_v19, 2 }
 0x104   :  { %1056 = vrot.lane.b32.xlu0 %v1019_v37, %s2817_s1  ;;  %1054 = vrot.lane.b32.xlu1 %v1017_v38, %s2817_s1  ;;  %v1034_v37 = vsel %vm533_vm4, %v1031_v2, %v1033_v9  ;;  %v982_v38 = vmul.f32 %v3168_v29, %v3198_v63  ;;  %v1037_v8 = vsel %vm533_vm4, %v1035_v33, %v1036_v24  ;;  %v3324_v2 = vpop.permute.xlu1 %321  ;;  %v1045_v9 = vrot.slane %v983_v59, 2 }
 0x105   :  { %v985_v29 = vmul.f32 %v3170_v30, %v3208_v6  ;;  %v1151_v33 = vmul.f32 %v3232_v50, %v3056_v12 }
 0x106   :  { %v1043_v55 = vrot.slane %v982_v38, 2  ;;  %v1047_v21 = vsel %vm533_vm4, %v1045_v9, %v1046_v16  ;;  %v1153_v38 = vmul.f32 %v3234_v51, %v3064_v17  ;;  %v1161_v9 = vmul.f32 %v3234_v51, %v3096_v35 }
 0x108   :  { %1060 = vrot.lane.b32.xlu0 %v1024_v45, %s2817_s1  ;;  %1058 = vrot.lane.b32.xlu1 %v1022_v52, %s2817_s1  ;;  %v3310_v45 = vpop.permute.xlu0 %317  ;;  %v1039_v52 = vsel %vm533_vm4, %v1036_v24, %v1038_v26  ;;  %v1044_v19 = vsel %vm533_vm4, %v1041_v53, %v1043_v55  ;;  %v3334_v24 = vpop.permute.xlu1 %470  ;;  %v1157_v55 = vmul.f32 %v3250_v0, %v3080_v27 }
 0x10c   :  { %1064 = vrot.lane.b32.xlu0 %v1029_v4, %s2817_s1  ;;  %1062 = vrot.lane.b32.xlu1 %v1027_v20, %s2817_s1  ;;  %v3326_v3 = vpop.permute.xlu0 %325  ;;  %v1042_v4 = vsel %vm533_vm4, %v1040_v58, %v1041_v53  ;;  %v1048_v20 = vrot.slane %v985_v29, 2  ;;  %v1156_v58 = vmul.f32 %v3250_v0, %v3082_v28 }
 0x10e   :  { %v1049_v30 = vsel %vm533_vm4, %v1046_v16, %v1048_v20  ;;  %v1159_v16 = vmul.f32 %v3232_v50, %v3088_v31 }
 0x110   :  { %1068 = vrot.lane.b32.xlu0 %v1034_v37, %s2817_s1  ;;  %1066 = vrot.lane.b32.xlu1 %v1032_v5, %s2817_s1  ;;  %v3336_v26 = vpop.permute.xlu0 %474  ;;  %v3346_v37 = vpop.permute.xlu1 %478 }
 0x114   :  { %1072 = vrot.lane.b32.xlu0 %v1039_v52, %s2817_s1  ;;  %1070 = vrot.lane.b32.xlu1 %v1037_v8, %s2817_s1  ;;  %v3348_v5 = vpop.permute.xlu0 %482  ;;  %v1155_v52 = vmul.f32 %v3248_v62, %v3072_v22  ;;  %v1154_v8 = vmul.f32 %v3248_v62, %v3074_v23  ;;  %v3360_v53 = vpop.permute.xlu1 %245 }
 0x118   :  { %1076 = vrot.lane.b32.xlu0 %v1044_v19, %s2817_s1  ;;  %1074 = vrot.lane.b32.xlu1 %v1042_v4, %s2817_s1  ;;  %v3362_v54 = vpop.permute.xlu0 %249  ;;  %v3372_v29 = vpop.permute.xlu1 %253  ;;  %v1158_v19 = vmul.f32 %v3232_v50, %v3090_v32 }
 0x11c   :  { %1080 = vrot.lane.b32.xlu0 %v1049_v30, %s2817_s1  ;;  %1078 = vrot.lane.b32.xlu1 %v1047_v21, %s2817_s1  ;;  %v3374_v59 = vpop.permute.xlu0 %257  ;;  %v1160_v30 = vmul.f32 %v3234_v51, %v3098_v36  ;;  %v1284_v51 = vmul.f32 %v3190_v56, %v3110_v43 }
 0x120   :  { %1184 = vrot.lane.b32.xlu0 %v1151_v33, %s2818_s15  ;;  %1182 = vrot.lane.b32.xlu1 %v1150_v34, %s2818_s15  ;;  %v1163_v33 = vmul.f32 %v3248_v62, %v3104_v39  ;;  %v1162_v34 = vmul.f32 %v3248_v62, %v3106_v40  ;;  %v1165_v62 = vmul.f32 %v3250_v0, %v3120_v47 }
 0x124   :  { %1188 = vrot.lane.b32.xlu0 %v1153_v38, %s2818_s15  ;;  %1186 = vrot.lane.b32.xlu1 %v1152_v41, %s2818_s15  ;;  %v1283_v38 = vmul.f32 %v3190_v56, %v3056_v12  ;;  %v1282_v41 = vmul.f32 %v3190_v56, %v3058_v13 }
 0x128   :  { %1192 = vrot.lane.b32.xlu0 %v1155_v52, %s2818_s15  ;;  %1190 = vrot.lane.b32.xlu1 %v1154_v8, %s2818_s15 }
 0x12c   :  { %1196 = vrot.lane.b32.xlu0 %v1157_v55, %s2818_s15  ;;  %1194 = vrot.lane.b32.xlu1 %v1156_v58, %s2818_s15  ;;  %v1164_v55 = vmul.f32 %v3250_v0, %v3122_v48  ;;  %v1286_v58 = vmul.f32 %v3192_v57, %v3064_v17 }
 0x12e   :  { %v1336_v0 = vrot.slane %v1286_v58, 1 }
 0x130   :  { %1200 = vrot.lane.b32.xlu0 %v1159_v16, %s2818_s15  ;;  %1198 = vrot.lane.b32.xlu1 %v1158_v19, %s2818_s15  ;;  %v1287_v16 = vmul.f32 %v3192_v57, %v3124_v49  ;;  %v1331_v19 = vrot.slane %v1283_v38, 1  ;;  %v1290_v38 = vmul.f32 %v3210_v11, %v3136_v61 }
 0x132   :  { %v3382_v4 = vpop.permute.xlu0 %676  ;;  %v3384_v20 = vpop.permute.xlu1 %674 }
 0x134   :  { %1204 = vrot.lane.b32.xlu0 %v1161_v9, %s2818_s15  ;;  %1202 = vrot.lane.b32.xlu1 %v1160_v30, %s2818_s15  ;;  %v1333_v9 = vrot.slane %v1284_v51, 1  ;;  %v1330_v30 = vrot.slane %v1282_v41, 1 }
 0x136   :  { %v3392_v21 = vpop.permute.xlu0 %680  ;;  %v3394_v50 = vpop.permute.xlu1 %678  ;;  %v1334_v51 = vsel %vm376_vm3, %v1331_v19, %v1333_v9  ;;  %v1332_v41 = vsel %vm376_vm3, %v1330_v30, %v1331_v19  ;;  %v1292_v9 = vmul.f32 %v3212_v14, %v3080_v27 }
 0x137   :  { %4325 = vst [vmem:[#allocation9_spill] sm:$0xff] %v3392_v21  ;;  %4326 = vst [vmem:[#allocation10_spill] sm:$0xff] %v3394_v50 }
 0x138   :  { %1208 = vrot.lane.b32.xlu0 %v1163_v33, %s2818_s15  ;;  %1206 = vrot.lane.b32.xlu1 %v1162_v34, %s2818_s15  ;;  %v1285_v33 = vmul.f32 %v3192_v57, %v3066_v18 }
 0x13a   :  { %v3408_v52 = vpop.permute.xlu0 %684  ;;  %v3410_v8 = vpop.permute.xlu1 %682  ;;  %v1335_v50 = vrot.slane %v1285_v33, 1  ;;  %v1293_v33 = vmul.f32 %v3212_v14, %v3154_v15 }
 0x13b   :  { %4327 = vst [vmem:[#allocation11_spill] sm:$0xff] %v3408_v52  ;;  %4328 = vst [vmem:[#allocation12_spill] sm:$0xff] %v3410_v8  ;;  %v1338_v8 = vrot.slane %v1287_v16, 1  ;;  %v1289_v52 = vmul.f32 %v3210_v11, %v3072_v22 }
 0x13c   :  { %1212 = vrot.lane.b32.xlu0 %v1165_v62, %s2818_s15  ;;  %1210 = vrot.lane.b32.xlu1 %v1164_v55, %s2818_s15  ;;  %v1288_v62 = vmul.f32 %v3210_v11, %v3074_v23  ;;  %v1337_v19 = vsel %vm376_vm3, %v1335_v50, %v1336_v0 }
 0x13d   :  { %v1339_v16 = vsel %vm376_vm3, %v1336_v0, %v1338_v8  ;;  %v1346_v0 = vrot.slane %v1292_v9, 1  ;;  %v1298_v9 = vmul.f32 %v3192_v57, %v3096_v35 }
 0x13e   :  { %v3424_v34 = vpop.permute.xlu0 %688  ;;  %v3426_v1 = vpop.permute.xlu1 %686  ;;  %v1340_v30 = vrot.slane %v1288_v62, 1 }
 0x13f   :  { %4329 = vst [vmem:[#allocation13_spill] sm:$0xff] %v3424_v34  ;;  %4330 = vst [vmem:[#allocation14_spill] sm:$0xff] %v3426_v1  ;;  %v1341_v1 = vrot.slane %v1289_v52, 1  ;;  %v1343_v34 = vrot.slane %v1290_v38, 1  ;;  %v1295_v52 = vmul.f32 %v3190_v56, %v3088_v31 }
 0x140   :  { %1372 = vrot.lane.b32.xlu0 %v1334_v51, %s2818_s15  ;;  %1370 = vrot.lane.b32.xlu1 %v1332_v41, %s2818_s15  ;;  %v1291_v51 = vmul.f32 %v3212_v14, %v3082_v28  ;;  %v1296_v41 = vmul.f32 %v3190_v56, %v3164_v25 }
 0x141   :  { %v1344_v50 = vsel %vm376_vm3, %v1341_v1, %v1343_v34  ;;  %v1342_v62 = vsel %vm376_vm3, %v1340_v30, %v1341_v1  ;;  %v1299_v1 = vmul.f32 %v3192_v57, %v3180_v46  ;;  %v1297_v30 = vmul.f32 %v3192_v57, %v3098_v36 }
 0x142   :  { %v3438_v55 = vpop.permute.xlu0 %692  ;;  %v3440_v58 = vpop.permute.xlu1 %690  ;;  %v1353_v34 = vrot.slane %v1296_v41, 1 }
 0x143   :  { %4331 = vst [vmem:[#allocation15_spill] sm:$0xff] %v3438_v55  ;;  %4332 = vst [vmem:[#allocation16_spill] sm:$0xff] %v3440_v58  ;;  %v1348_v58 = vrot.slane %v1293_v33, 1  ;;  %v1345_v55 = vrot.slane %v1291_v51, 1 }
 0x144   :  { %1376 = vrot.lane.b32.xlu0 %v1339_v16, %s2818_s15  ;;  %1374 = vrot.lane.b32.xlu1 %v1337_v19, %s2818_s15  ;;  %v1294_v16 = vmul.f32 %v3190_v56, %v3090_v32  ;;  %v1351_v19 = vrot.slane %v1295_v52, 1 }
 0x145   :  { %v1349_v56 = vsel %vm376_vm3, %v1346_v0, %v1348_v58  ;;  %v1347_v33 = vsel %vm376_vm3, %v1345_v55, %v1346_v0  ;;  %v1301_v58 = vmul.f32 %v3210_v11, %v3104_v39  ;;  %v1302_v55 = vmul.f32 %v3210_v11, %v3198_v63 }
 0x146   :  { %v3454_v8 = vpop.permute.xlu0 %696  ;;  %v3456_v38 = vpop.permute.xlu1 %694  ;;  %v1350_v51 = vrot.slane %v1294_v16, 1  ;;  %v1354_v41 = vsel %vm376_vm3, %v1351_v19, %v1353_v34  ;;  %v1300_v0 = vmul.f32 %v3210_v11, %v3106_v40 }
 0x147   :  { %4333 = vst [vmem:[#allocation17_spill] sm:$0xff] %v3454_v8  ;;  %4334 = vst [vmem:[#allocation18_spill] sm:$0xff] %v3456_v38  ;;  %v1363_v11 = vrot.slane %v1302_v55, 1 }
 0x148   :  { %1380 = vrot.lane.b32.xlu0 %v1344_v50, %s2818_s15  ;;  %1378 = vrot.lane.b32.xlu1 %v1342_v62, %s2818_s15  ;;  %v1356_v62 = vrot.slane %v1298_v9, 1  ;;  %v1352_v57 = vsel %vm376_vm3, %v1350_v51, %v1351_v19  ;;  %v1303_v51 = vmul.f32 %v3212_v14, %v3122_v48 }
 0x14a   :  { %v3466_v8 = vpop.permute.xlu0 %700  ;;  %v3468_v38 = vpop.permute.xlu1 %698 }
 0x14b   :  { %4335 = vst [vmem:[#allocation19_spill] sm:$0xff] %v3466_v8  ;;  %4336 = vst [vmem:[#allocation20_spill] sm:$0xff] %v3468_v38  ;;  %v1358_v38 = vrot.slane %v1299_v1, 1  ;;  %v1355_v8 = vrot.slane %v1297_v30, 1  ;;  %v1304_v1 = vmul.f32 %v3212_v14, %v3120_v47  ;;  %v1305_v30 = vmul.f32 %v3212_v14, %v3208_v6 }
 0x14c   :  { %1384 = vrot.lane.b32.xlu0 %v1349_v56, %s2818_s15  ;;  %1382 = vrot.lane.b32.xlu1 %v1347_v33, %s2818_s15  ;;  %v1361_v56 = vrot.slane %v1301_v58, 1  ;;  %v1360_v33 = vrot.slane %v1300_v0, 1  ;;  %v1472_v58 = vmul.f32 %v3270_v44, %v3110_v43  ;;  %v1365_v0 = vrot.slane %v1303_v51, 1 }
 0x14d   :  { %v1359_v9 = vsel %vm376_vm3, %v1356_v62, %v1358_v38  ;;  %v1357_v19 = vsel %vm376_vm3, %v1355_v8, %v1356_v62  ;;  %v1366_v8 = vrot.slane %v1304_v1, 1  ;;  %v1368_v62 = vrot.slane %v1305_v30, 1 }
 0x14e   :  { %v3480_v52 = vpop.permute.xlu0 %704  ;;  %v3482_v50 = vpop.permute.xlu1 %702  ;;  %v1364_v55 = vsel %vm376_vm3, %v1361_v56, %v1363_v11  ;;  %v1362_v14 = vsel %vm376_vm3, %v1360_v33, %v1361_v56  ;;  %v1474_v11 = vmul.f32 %v3272_v10, %v3064_v17  ;;  %v1475_v51 = vmul.f32 %v3272_v10, %v3124_v49 }
 0x14f   :  { %4337 = vst [vmem:[#allocation21_spill] sm:$0xff] %v3480_v52  ;;  %4338 = vst [vmem:[#allocation22_spill] sm:$0xff] %v3482_v50  ;;  %v1369_v30 = vsel %vm376_vm3, %v1366_v8, %v1368_v62  ;;  %v1521_v52 = vrot.slane %v1472_v58, 2  ;;  %v1367_v56 = vsel %vm376_vm3, %v1365_v0, %v1366_v8  ;;  %v1477_v8 = vmul.f32 %v3286_v60, %v3072_v22 }
 0x150   :  { %1388 = vrot.lane.b32.xlu0 %v1354_v41, %s2818_s15  ;;  %1386 = vrot.lane.b32.xlu1 %v1352_v57, %s2818_s15  ;;  %v1471_v57 = vmul.f32 %v3270_v44, %v3056_v12  ;;  %v1524_v58 = vrot.slane %v1474_v11, 2  ;;  %v1478_v0 = vmul.f32 %v3286_v60, %v3136_v61 }
 0x151   :  { %v1529_v11 = vrot.slane %v1477_v8, 2 }
 0x152   :  { %v3494_v16 = vpop.permute.xlu0 %864  ;;  %v3496_v34 = vpop.permute.xlu1 %862  ;;  %v1519_v50 = vrot.slane %v1471_v57, 2 }
 0x154   :  { %1392 = vrot.lane.b32.xlu0 %v1359_v9, %s2818_s15  ;;  %1390 = vrot.lane.b32.xlu1 %v1357_v19, %s2818_s15  ;;  %v1470_v9 = vmul.f32 %v3270_v44, %v3058_v13  ;;  %v1522_v57 = vsel %vm533_vm4, %v1519_v50, %v1521_v52 }
 0x156   :  { %v3508_v41 = vpop.permute.xlu0 %868  ;;  %v3510_v38 = vpop.permute.xlu1 %866  ;;  %v1518_v33 = vrot.slane %v1470_v9, 2 }
 0x157   :  { %4339 = vst [vmem:[#allocation23_spill] sm:$0xff] %v3508_v41  ;;  %4340 = vst [vmem:[#allocation24_spill] sm:$0xff] %v3510_v38 }
 0x158   :  { %1396 = vrot.lane.b32.xlu0 %v1364_v55, %s2818_s15  ;;  %1394 = vrot.lane.b32.xlu1 %v1362_v14, %s2818_s15  ;;  %v1473_v55 = vmul.f32 %v3272_v10, %v3066_v18  ;;  %v1520_v9 = vsel %vm533_vm4, %v1518_v33, %v1519_v50  ;;  %v1481_v50 = vmul.f32 %v3288_v7, %v3154_v15 }
 0x15a   :  { %v3522_v19 = vpop.permute.xlu0 %872  ;;  %v3524_v1 = vpop.permute.xlu1 %870 }
 0x15b   :  { %4341 = vst [vmem:[#allocation25_spill] sm:$0xff] %v3522_v19  ;;  %4342 = vst [vmem:[#allocation26_spill] sm:$0xff] %v3524_v1  ;;  %v1526_v1 = vrot.slane %v1475_v51, 2  ;;  %v1523_v19 = vrot.slane %v1473_v55, 2 }
 0x15c   :  { %1400 = vrot.lane.b32.xlu0 %v1369_v30, %s2818_s15  ;;  %1398 = vrot.lane.b32.xlu1 %v1367_v56, %s2818_s15  ;;  %v1476_v30 = vmul.f32 %v3286_v60, %v3074_v23 }
 0x15d   :  { %v1527_v33 = vsel %vm533_vm4, %v1524_v58, %v1526_v1  ;;  %v1525_v51 = vsel %vm533_vm4, %v1523_v19, %v1524_v58  ;;  %v1483_v1 = vmul.f32 %v3270_v44, %v3088_v31 }
 0x15e   :  { %v3536_v14 = vpop.permute.xlu0 %876  ;;  %v3538_v62 = vpop.permute.xlu1 %874  ;;  %v1528_v55 = vrot.slane %v1476_v30, 2  ;;  %v1482_v30 = vmul.f32 %v3270_v44, %v3090_v32 }
 0x15f   :  { %4343 = vst [vmem:[#allocation27_spill] sm:$0xff] %v3536_v14  ;;  %4344 = vst [vmem:[#allocation28_spill] sm:$0xff] %v3538_v62  ;;  %v1531_v62 = vrot.slane %v1478_v0, 2  ;;  %v1480_v14 = vmul.f32 %v3288_v7, %v3080_v27 }
 0x160   :  { %1560 = vrot.lane.b32.xlu0 %v1522_v57, %s2818_s15  ;;  %1558 = vrot.lane.b32.xlu1 %v1520_v9, %s2818_s15  ;;  %v1479_v57 = vmul.f32 %v3288_v7, %v3082_v28  ;;  %v1530_v19 = vsel %vm533_vm4, %v1528_v55, %v1529_v11  ;;  %v1484_v28 = vmul.f32 %v3270_v44, %v3164_v25  ;;  %v1538_v44 = vrot.slane %v1482_v30, 2 }
 0x161   :  { %v1532_v9 = vsel %vm533_vm4, %v1529_v11, %v1531_v62  ;;  %v1486_v11 = vmul.f32 %v3272_v10, %v3096_v35 }
 0x162   :  { %v3550_v56 = vpop.permute.xlu0 %880  ;;  %v3552_v52 = vpop.permute.xlu1 %878  ;;  %v1533_v58 = vrot.slane %v1479_v57, 2  ;;  %v1541_v32 = vrot.slane %v1484_v28, 2  ;;  %v1485_v57 = vmul.f32 %v3272_v10, %v3098_v36  ;;  %v1488_v28 = vmul.f32 %v3286_v60, %v3106_v40 }
 0x163   :  { %4345 = vst [vmem:[#allocation29_spill] sm:$0xff] %v3550_v56  ;;  %4346 = vst [vmem:[#allocation30_spill] sm:$0xff] %v3552_v52  ;;  %v1534_v52 = vrot.slane %v1480_v14, 2  ;;  %v1536_v56 = vrot.slane %v1481_v50, 2  ;;  %v1539_v50 = vrot.slane %v1483_v1, 2  ;;  %v1544_v1 = vrot.slane %v1486_v11, 2 }
 0x164   :  { %1564 = vrot.lane.b32.xlu0 %v1527_v33, %s2818_s15  ;;  %1562 = vrot.lane.b32.xlu1 %v1525_v51, %s2818_s15  ;;  %v1487_v51 = vmul.f32 %v3272_v10, %v3180_v46  ;;  %v1543_v10 = vrot.slane %v1485_v57, 2  ;;  %v1493_v40 = vmul.f32 %v3288_v7, %v3208_v6 }
 0x165   :  { %v1537_v62 = vsel %vm533_vm4, %v1534_v52, %v1536_v56  ;;  %v1535_v55 = vsel %vm533_vm4, %v1533_v58, %v1534_v52  ;;  %v1490_v52 = vmul.f32 %v3286_v60, %v3198_v63  ;;  %v1542_v58 = vsel %vm533_vm4, %v1539_v50, %v1541_v32 }
 0x166   :  { %v3564_v8 = vpop.permute.xlu0 %884  ;;  %v3566_v0 = vpop.permute.xlu1 %882  ;;  %v1546_v35 = vrot.slane %v1487_v51, 2  ;;  %v1540_v36 = vsel %vm533_vm4, %v1538_v44, %v1539_v50  ;;  %v1545_v50 = vsel %vm533_vm4, %v1543_v10, %v1544_v1  ;;  %v1548_v32 = vrot.slane %v1488_v28, 2 }
 0x167   :  { %4347 = vst [vmem:[#allocation31_spill] sm:$0xff] %v3564_v8  ;;  %4348 = vst [vmem:[#allocation32_spill] sm:$0xff] %v3566_v0  ;;  %v1551_v51 = vrot.slane %v1490_v52, 2 }
 0x168   :  { %1568 = vrot.lane.b32.xlu0 %v1532_v9, %s2818_s15  ;;  %1566 = vrot.lane.b32.xlu1 %v1530_v19, %s2818_s15  ;;  %v1489_v19 = vmul.f32 %v3286_v60, %v3104_v39  ;;  %v1547_v39 = vsel %vm533_vm4, %v1544_v1, %v1546_v35  ;;  %v1491_v60 = vmul.f32 %v3288_v7, %v3122_v48 }
 0x16a   :  { %v3578_v33 = vpop.permute.xlu0 %888  ;;  %v3580_v14 = vpop.permute.xlu1 %886  ;;  %v1549_v11 = vrot.slane %v1489_v19, 2  ;;  %v1556_v19 = vrot.slane %v1493_v40, 2  ;;  %v1553_v52 = vrot.slane %v1491_v60, 2 }
 0x16b   :  { %4349 = vst [vmem:[#allocation33_spill] sm:$0xff] %v3578_v33  ;;  %4350 = vst [vmem:[#allocation34_spill] sm:$0xff] %v3580_v14  ;;  %v331_v33 = vmul.f32 %v3310_v45, %v3066_v18  ;;  %v334_v18 = vmul.f32 %v3324_v2, %v3074_v23  ;;  %v2744_v23 = vld [vmem:[#allocation2 + $0x8] sm:$0xff] }
 0x16c   :  { %1572 = vrot.lane.b32.xlu0 %v1537_v62, %s2818_s15  ;;  %1570 = vrot.lane.b32.xlu1 %v1535_v55, %s2818_s15  ;;  %v1492_v55 = vmul.f32 %v3288_v7, %v3120_v47  ;;  %v1552_v47 = vsel %vm533_vm4, %v1549_v11, %v1551_v51  ;;  %v1550_v1 = vsel %vm533_vm4, %v1548_v32, %v1549_v11 }
 0x16e   :  { %v3592_v9 = vpop.permute.xlu0 %892  ;;  %v3594_v56 = vpop.permute.xlu1 %890  ;;  %v1554_v35 = vrot.slane %v1492_v55, 2 }
 0x16f   :  { %4351 = vst [vmem:[#allocation35_spill] sm:$0xff] %v3592_v9  ;;  %4352 = vst [vmem:[#allocation36_spill] sm:$0xff] %v3594_v56  ;;  %v328_v56 = vmul.f32 %v3308_v42, %v3058_v13  ;;  %v332_v9 = vmul.f32 %v3310_v45, %v3064_v17  ;;  %v335_v17 = vmul.f32 %v3324_v2, %v3072_v22 }
 0x170   :  { %1576 = vrot.lane.b32.xlu0 %v1542_v58, %s2818_s15  ;;  %1574 = vrot.lane.b32.xlu1 %v1540_v36, %s2818_s15  ;;  %v1557_v7 = vsel %vm533_vm4, %v1554_v35, %v1556_v19  ;;  %v1555_v58 = vsel %vm533_vm4, %v1553_v52, %v1554_v35  ;;  %v490_v22 = vmul.f32 %v3336_v26, %v3124_v49 }
 0x171   :  { %v377_v0 = vrot.slane %v328_v56, 1  ;;  %v487_v56 = vmul.f32 %v3334_v24, %v3110_v43 }
 0x172   :  { %v3606_v30 = vpop.permute.xlu0 %1052  ;;  %v3608_v62 = vpop.permute.xlu1 %1050 }
 0x173   :  { %4353 = vst [vmem:[#allocation37_spill] sm:$0xff] %v3606_v30  ;;  %4354 = vst [vmem:[#allocation38_spill] sm:$0xff] %v3608_v62 }
 0x174   :  { %1580 = vrot.lane.b32.xlu0 %v1547_v39, %s2818_s15  ;;  %1578 = vrot.lane.b32.xlu1 %v1545_v50, %s2818_s15 }
 0x176   :  { %v3620_v44 = vpop.permute.xlu0 %1056  ;;  %v3622_v57 = vpop.permute.xlu1 %1054 }
 0x177   :  { %4355 = vst [vmem:[#allocation39_spill] sm:$0xff] %v3620_v44  ;;  %4356 = vst [vmem:[#allocation40_spill] sm:$0xff] %v3622_v57  ;;  %v2750_v57 = vld [vmem:[#allocation2 + $0x38] sm:$0xff] }
 0x178   :  { %1584 = vrot.lane.b32.xlu0 %v1552_v47, %s2818_s15  ;;  %1582 = vrot.lane.b32.xlu1 %v1550_v1, %s2818_s15 }
 0x17a   :  { %v3628_v48 = vpop.permute.xlu0 %1060  ;;  %v3630_v6 = vpop.permute.xlu1 %1058 }
 0x17b   :  { %4357 = vst [vmem:[#allocation41_spill] sm:$0xff] %v3628_v48  ;;  %4358 = vst [vmem:[#allocation42_spill] sm:$0xff] %v3630_v6 }
 0x17c   :  { %1588 = vrot.lane.b32.xlu0 %v1557_v7, %s2818_s15  ;;  %1586 = vrot.lane.b32.xlu1 %v1555_v58, %s2818_s15 }
 0x17e   :  { %v3636_v36 = vpop.permute.xlu0 %1064  ;;  %v3638_v10 = vpop.permute.xlu1 %1062 }
 0x17f   :  { %4359 = vst [vmem:[#allocation43_spill] sm:$0xff] %v3636_v36  ;;  %4360 = vst [vmem:[#allocation44_spill] sm:$0xff] %v3638_v10  ;;  %v2747_v10 = vld [vmem:[#allocation2 + $0x18] sm:$0xff] }
 0x182   :  { %v3640_v28 = vpop.permute.xlu0 %1068  ;;  %v3642_v39 = vpop.permute.xlu1 %1066 }
 0x183   :  { %4361 = vst [vmem:[#allocation45_spill] sm:$0xff] %v3640_v28  ;;  %4362 = vst [vmem:[#allocation46_spill] sm:$0xff] %v3642_v39  ;;  %v382_v28 = vrot.slane %v331_v33, 1 }
 0x186   :  { %v3644_v11 = vpop.permute.xlu0 %1072  ;;  %v3646_v51 = vpop.permute.xlu1 %1070 }
 0x187   :  { %4363 = vst [vmem:[#allocation47_spill] sm:$0xff] %v3644_v11  ;;  %4364 = vst [vmem:[#allocation48_spill] sm:$0xff] %v3646_v51  ;;  %v3690_v51 = vmul.f32 %v3308_v42, %v3088_v31 }
 0x189   :  { %v4383_v48 = vrot.slane %v3690_v51, 1 }
 0x18a   :  { %v3648_v55 = vpop.permute.xlu0 %1076  ;;  %v3650_v50 = vpop.permute.xlu1 %1074 }
 0x18b   :  { %4365 = vst [vmem:[#allocation49_spill] sm:$0xff] %v3648_v55  ;;  %4366 = vst [vmem:[#allocation50_spill] sm:$0xff] %v3650_v50  ;;  %v333_v50 = vmul.f32 %v3310_v45, %v3124_v49  ;;  %v2748_v49 = vld [vmem:[#allocation2 + $0x48] sm:$0xff] }
 0x18d   :  { %v385_v8 = vrot.slane %v333_v50, 1  ;;  %v388_v50 = vrot.slane %v335_v17, 1 }
 0x18e   :  { %v3652_v32 = vpop.permute.xlu0 %1080  ;;  %v3654_v40 = vpop.permute.xlu1 %1078 }
 0x18f   :  { %4367 = vst [vmem:[#allocation51_spill] sm:$0xff] %v3652_v32  ;;  %4368 = vst [vmem:[#allocation52_spill] sm:$0xff] %v3654_v40  ;;  %v330_v32 = vmul.f32 %v3308_v42, %v3110_v43  ;;  %v329_v40 = vmul.f32 %v3308_v42, %v3056_v12  ;;  %v342_v12 = vmul.f32 %v3308_v42, %v3164_v25 }
 0x191   :  { %v380_v13 = vrot.slane %v330_v32, 1  ;;  %v378_v11 = vrot.slane %v329_v40, 1  ;;  %v3706_v32 = vmul.f32 %v3326_v3, %v3080_v27  ;;  %v400_v40 = vrot.slane %v342_v12, 1 }
 0x192   :  { %v3656_v60 = vpop.permute.xlu0 %1184  ;;  %v3658_v35 = vpop.permute.xlu1 %1182 }
 0x193   :  { %4369 = vst [vmem:[#allocation53_spill] sm:$0xff] %v3656_v60  ;;  %4370 = vst [vmem:[#allocation54_spill] sm:$0xff] %v3658_v35  ;;  %v379_v12 = vsel %vm376_vm3, %v377_v0, %v378_v11  ;;  %v393_v6 = vrot.slane %v3706_v32, 1  ;;  %v337_v0 = vmul.f32 %v2748_v49, %v3326_v3  ;;  %v2751_v35 = vld [vmem:[#allocation2 + $0x30] sm:$0xff] }
 0x196   :  { %v3660_v47 = vpop.permute.xlu0 %1188  ;;  %v3662_v1 = vpop.permute.xlu1 %1186 }
 0x197   :  { %4371 = vst [vmem:[#allocation55_spill] sm:$0xff] %v3660_v47  ;;  %4372 = vst [vmem:[#allocation56_spill] sm:$0xff] %v3662_v1  ;;  %v542_v1 = vrot.slane %v490_v22, 2 }
 0x19a   :  { %v3664_v19 = vpop.permute.xlu0 %1192  ;;  %v3666_v52 = vpop.permute.xlu1 %1190 }
 0x19b   :  { %4373 = vst [vmem:[#allocation57_spill] sm:$0xff] %v3664_v19  ;;  %4374 = vst [vmem:[#allocation58_spill] sm:$0xff] %v3666_v52  ;;  %v339_v19 = vmul.f32 %v3326_v3, %v3154_v15 }
 0x19e   :  { %v3668_v7 = vpop.permute.xlu0 %1196  ;;  %v3670_v58 = vpop.permute.xlu1 %1194 }
 0x19f   :  { %4375 = vst [vmem:[#allocation59_spill] sm:$0xff] %v3668_v7  ;;  %4376 = vst [vmem:[#allocation60_spill] sm:$0xff] %v3670_v58  ;;  %v2745_v7 = vld [vmem:[#allocation2] sm:$0xff] }
 0x1a0   :  { %v485_v33 = vmul.f32 %v2745_v7, %v3334_v24  ;;  %v260_v60 = vmul.f32 %v2745_v7, %v3360_v53 }
 0x1a2   :  { %v3682_v55 = vpop.permute.xlu0 %1200  ;;  %v3684_v14 = vpop.permute.xlu1 %1198 }
 0x1a3   :  { %4377 = vst [vmem:[#allocation61_spill] sm:$0xff] %v3682_v55  ;;  %4378 = vst [vmem:[#allocation62_spill] sm:$0xff] %v3684_v14  ;;  %v336_v55 = vmul.f32 %v3324_v2, %v3136_v61  ;;  %v383_v14 = vrot.slane %v332_v9, 1  ;;  %v381_v9 = vsel %vm376_vm3, %v378_v11, %v380_v13  ;;  %v488_v13 = vmul.f32 %v2747_v10, %v3336_v26 }
 0x1a4   :  { %v537_v11 = vrot.slane %v487_v56, 2  ;;  %v492_v56 = vmul.f32 %v2750_v57, %v3346_v37 }
 0x1a5   :  { %v390_v58 = vrot.slane %v336_v55, 1  ;;  %v386_v43 = vsel %vm376_vm3, %v383_v14, %v385_v8  ;;  %v387_v55 = vrot.slane %v334_v18, 1  ;;  %v384_v52 = vsel %vm376_vm3, %v382_v28, %v383_v14 }
 0x1a6   :  { %v3700_v39 = vpop.permute.xlu0 %1204  ;;  %v3702_v31 = vpop.permute.xlu1 %1202  ;;  %v3733_v18 = vsel %vm376_vm3, %v4383_v48, %v400_v40  ;;  %v539_v47 = vrot.slane %v488_v13, 2  ;;  %v261_v13 = vmul.f32 %v2744_v23, %v3360_v53 }
 0x1a7   :  { %4379 = vst [vmem:[#allocation63_spill] sm:$0xff] %v3700_v39  ;;  %4380 = vst [vmem:[#allocation64_spill] sm:$0xff] %v3702_v31  ;;  %v486_v39 = vmul.f32 %v2744_v23, %v3334_v24  ;;  %v2746_v31 = vld [vmem:[#allocation2 + $0x20] sm:$0xff]  ;;  %v391_v8 = vsel %vm376_vm3, %v388_v50, %v390_v58  ;;  %v493_v58 = vmul.f32 %v3346_v37, %v3136_v61 }
 0x1a8   :  { %v489_v27 = vmul.f32 %v2746_v31, %v3336_v26  ;;  %v389_v48 = vsel %vm376_vm3, %v387_v55, %v388_v50  ;;  %v263_v61 = vmul.f32 %v2746_v31, %v3362_v54  ;;  %v496_v50 = vmul.f32 %v3348_v5, %v3154_v15 }
 0x1a9   :  { %v535_v28 = vrot.slane %v486_v39, 2  ;;  %v395_v39 = vrot.slane %v339_v19, 1  ;;  %v262_v19 = vmul.f32 %v2747_v10, %v3362_v54  ;;  %v547_v41 = vrot.slane %v493_v58, 2 }
 0x1aa   :  { %v3720_v17 = vpop.permute.xlu0 %1208  ;;  %v3722_v36 = vpop.permute.xlu1 %1206  ;;  %v540_v32 = vrot.slane %v489_v27, 2  ;;  %v392_v27 = vrot.slane %v337_v0, 1  ;;  %v545_v0 = vrot.slane %v492_v56, 2  ;;  %v494_v23 = vmul.f32 %v2748_v49, %v3348_v5  ;;  %v2753_v56 = vld [vmem:[#allocation2 + $0x68] sm:$0xff] }
 0x1ab   :  { %4381 = vst [vmem:[#allocation65_spill] sm:$0xff] %v3720_v17  ;;  %4382 = vst [vmem:[#allocation66_spill] sm:$0xff] %v3722_v36  ;;  %v3735_v17 = vld [vmem:[#allocation2 + $0x60] sm:$0xff]  ;;  %v534_v36 = vrot.slane %v485_v33, 2  ;;  %v2752_v33 = vld [vmem:[#allocation2 + $0x50] sm:$0xff]  ;;  %v538_v55 = vsel %vm533_vm4, %v535_v28, %v537_v11  ;;  %v265_v15 = vmul.f32 %v2750_v57, %v3372_v29  ;;  %v396_v11 = vsel %vm376_vm3, %v393_v6, %v395_v39 }
 0x1ac   :  { %v3739_v14 = vmul.f32 %v3735_v17, %v3308_v42  ;;  %v491_v42 = vmul.f32 %v2751_v35, %v3346_v37  ;;  %v495_v22 = vmul.f32 %v2752_v33, %v3348_v5  ;;  %v541_v38 = vsel %vm533_vm4, %v539_v47, %v540_v32 }
 0x1ad   :  { %v436_v30 = vadd.f32 %v386_v43, %v263_v61  ;;  %v552_v10 = vrot.slane %v496_v50, 2  ;;  %v435_v21 = vadd.f32 %v384_v52, %v262_v19  ;;  %v264_v47 = vmul.f32 %v2751_v35, %v3372_v29 }
 0x1ae   :  { %v3745_v40 = vpop.permute.xlu0 %1212  ;;  %v3747_v44 = vpop.permute.xlu1 %1210  ;;  %v544_v62 = vrot.slane %v491_v42, 2  ;;  %v3771_v58 = vmul.f32 %v2753_v56, %v3334_v24  ;;  %v267_v57 = vmul.f32 %v2752_v33, %v3374_v59  ;;  %v549_v42 = vrot.slane %v494_v23, 2  ;;  %v2755_v23 = vld [vmem:[#allocation2 + $0x78] sm:$0xff] }
 0x1af   :  { %4384 = vst [vmem:[#allocation67_spill] sm:$0xff] %v3745_v40  ;;  %4385 = vst [vmem:[#allocation68_spill] sm:$0xff] %v3747_v44  ;;  %v536_v44 = vsel %vm533_vm4, %v534_v36, %v535_v28  ;;  %v543_v40 = vsel %vm533_vm4, %v540_v32, %v542_v1  ;;  %v550_v36 = vrot.slane %v495_v22, 2  ;;  %v434_v28 = vadd.f32 %v381_v9, %v261_v13  ;;  %v2754_v13 = vld [vmem:[#allocation2 + $0x80] sm:$0xff] }
 0x1b0   :  { %v433_v1 = vadd.f32 %v379_v12, %v260_v60  ;;  %v394_v32 = vsel %vm376_vm3, %v392_v27, %v393_v6  ;;  %v499_v9 = vmul.f32 %v3334_v24, %v3164_v25  ;;  %v438_v52 = vadd.f32 %v391_v8, %v265_v15 }
 0x1b1   :  { %v546_v35 = vsel %vm533_vm4, %v544_v62, %v545_v0  ;;  %v266_v6 = vmul.f32 %v2748_v49, %v3374_v59  ;;  %v269_v43 = vmul.f32 %v2753_v56, %v3360_v53  ;;  %v3784_v39 = vadd.f32 %v538_v55, %v434_v28  ;;  %v2756_v28 = vld [vmem:[#allocation2 + $0x88] sm:$0x3] }
 0x1b2   :  { %v3762_v7 = vpop.permute.xlu0 %1372  ;;  %v3764_v31 = vpop.permute.xlu1 %1370  ;;  %v3788_v33 = vadd.f32 %v543_v40, %v436_v30  ;;  %v553_v22 = vsel %vm533_vm4, %v550_v36, %v552_v10  ;;  %v3791_v25 = vadd.f32 %v541_v38, %v435_v21  ;;  %v437_v27 = vadd.f32 %v389_v48, %v264_v47 }
 0x1b3   :  { %4386 = vst [vmem:[#allocation69_spill] sm:$0xff] %v3764_v31  ;;  %v548_v31 = vsel %vm533_vm4, %v545_v0, %v547_v41  ;;  %v3786_v41 = vadd.f32 %v536_v44, %v433_v1  ;;  %v344_v8 = vmul.f32 %v2754_v13, %v3310_v45  ;;  %v345_v62 = vmul.f32 %v3310_v45, %v3180_v46  ;;  %v2757_v1 = vld [vmem:[#allocation2 + $0x98] sm:$0xff] }
 0x1b4   :  { %v440_v49 = vadd.f32 %v396_v11, %v267_v57  ;;  %v551_v61 = vsel %vm533_vm4, %v549_v42, %v550_v36  ;;  %v555_v50 = vrot.slane %v3771_v58, 2  ;;  %v557_v44 = vrot.slane %v499_v9, 2 }
 0x1b5   :  { %v3802_v40 = vadd.f32 %v548_v31, %v438_v52  ;;  %v439_v21 = vadd.f32 %v394_v32, %v266_v6  ;;  %v442_v38 = vadd.f32 %v3733_v18, %v269_v43  ;;  %v397_v48 = vrot.slane %v3739_v14, 1 }
 0x1b6   :  { %v3777_v60 = vpop.permute.xlu0 %1376  ;;  %v3779_v12 = vpop.permute.xlu1 %1374  ;;  %v268_v46 = vmul.f32 %v3735_v17, %v3360_v53  ;;  %v497_v19 = vmul.f32 %v3735_v17, %v3334_v24  ;;  %v3811_v0 = vmul.f32 %v2754_v13, %v3336_v26  ;;  %v343_v15 = vmul.f32 %v2755_v23, %v3310_v45 }
 0x1b7   :  { %v3814_v11 = vadd.f32 %v546_v35, %v437_v27  ;;  %v403_v31 = vrot.slane %v344_v8, 1  ;;  %v405_v36 = vrot.slane %v345_v62, 1  ;;  %v502_v18 = vmul.f32 %v2756_v28, %v3336_v26 }
 0x1b8   :  { %v3817_v14 = vadd.f32 %v553_v22, %v440_v49  ;;  %v558_v53 = vsel %vm533_vm4, %v555_v50, %v557_v44  ;;  %v347_v24 = vmul.f32 %v2757_v1, %v3324_v2  ;;  %v348_v17 = vmul.f32 %v3324_v2, %v3198_v63  ;;  %v2758_v22 = vld [vmem:[#allocation2 + $0x90] sm:$0xff]  ;;  %v2759_v49 = vld [vmem:[#allocation2 + $0xa0] sm:$0x3] }
 0x1b9   :  { %v3827_v47 = vadd.f32 %v551_v61, %v439_v21  ;;  %v3829_v32 = vadd.f32 %v558_v53, %v442_v38  ;;  %v4387_v56 = vrot.slane %v3690_v51, 1  ;;  %v271_v57 = vmul.f32 %v2754_v13, %v3362_v54 }
 0x1ba   :  { %v3798_v55 = vpop.permute.xlu0 %1380  ;;  %v3800_v30 = vpop.permute.xlu1 %1378  ;;  %v554_v42 = vrot.slane %v497_v19, 2  ;;  %v560_v9 = vrot.slane %v3811_v0, 2  ;;  %v270_v52 = vmul.f32 %v2755_v23, %v3362_v54  ;;  %v402_v63 = vrot.slane %v343_v15, 1  ;;  %v2760_v19 = vld [vmem:[#allocation2 + $0xb0] sm:$0xff] }
 0x1bb   :  { %v399_v58 = vsel %vm376_vm3, %v397_v48, %v4387_v56  ;;  %v406_v35 = vsel %vm376_vm3, %v403_v31, %v405_v36  ;;  %v562_v6 = vrot.slane %v502_v18, 2  ;;  %v500_v43 = vmul.f32 %v2755_v23, %v3336_v26  ;;  %v2761_v23 = vld [vmem:[#allocation2 + $0xb8] sm:$0x3] }
 0x1bc   :  { %v346_v27 = vmul.f32 %v2758_v22, %v3324_v2  ;;  %v408_v8 = vrot.slane %v347_v24, 1  ;;  %v410_v51 = vrot.slane %v348_v17, 1  ;;  %v504_v62 = vmul.f32 %v2757_v1, %v3346_v37 }
 0x1bd   :  { %v505_v13 = vmul.f32 %v2759_v49, %v3346_v37  ;;  %v441_v54 = vadd.f32 %v399_v58, %v268_v46  ;;  %v444_v21 = vadd.f32 %v406_v35, %v271_v57  ;;  %v273_v38 = vmul.f32 %v2757_v1, %v3372_v29 }
 0x1be   :  { %v3823_v10 = vpop.permute.xlu0 %1384  ;;  %v3825_v45 = vpop.permute.xlu1 %1382  ;;  %v503_v26 = vmul.f32 %v2758_v22, %v3346_v37  ;;  %v556_v48 = vsel %vm533_vm4, %v554_v42, %v555_v50  ;;  %v404_v2 = vsel %vm376_vm3, %v402_v63, %v403_v31  ;;  %v3851_v0 = vmul.f32 %v2760_v19, %v3326_v3 }
 0x1bf   :  { %v351_v15 = vmul.f32 %v2761_v23, %v3326_v3  ;;  %v563_v36 = vsel %vm533_vm4, %v560_v9, %v562_v6  ;;  %v443_v28 = vadd.f32 %v404_v2, %v270_v52  ;;  %v559_v46 = vrot.slane %v500_v43, 2 }
 0x1c0   :  { %v407_v18 = vrot.slane %v346_v27, 1  ;;  %v411_v53 = vsel %vm376_vm3, %v408_v8, %v410_v51  ;;  %v565_v1 = vrot.slane %v504_v62, 2  ;;  %v567_v37 = vrot.slane %v505_v13, 2 }
 0x1c1   :  { %v272_v50 = vmul.f32 %v2758_v22, %v3372_v29  ;;  %v3861_v17 = vadd.f32 %v556_v48, %v441_v54  ;;  %v3863_v56 = vadd.f32 %v563_v36, %v444_v21  ;;  %v446_v58 = vadd.f32 %v411_v53, %v273_v38  ;;  %v2762_v38 = vld [vmem:[#allocation2 + $0xa8] sm:$0xff]  ;;  %v4388_v48 = vld [vmem:[#allocation9_spill] sm:$0xff] }
 0x1c2   :  { %v3842_v61 = vpop.permute.xlu0 %1388  ;;  %v3844_v44 = vpop.permute.xlu1 %1386  ;;  %v564_v57 = vrot.slane %v503_v26, 2  ;;  %v413_v42 = vrot.slane %v3851_v0, 1  ;;  %v415_v52 = vrot.slane %v351_v15, 1  ;;  %v3867_v63 = vmul.f32 %v2760_v19, %v3348_v5  ;;  %v4390_v15 = vld [vmem:[#allocation37_spill] sm:$0xff]  ;;  %v4391_v36 = vld [vmem:[#allocation38_spill] sm:$0xff]  ;;  %v4413_v0 = vld [vmem:[#allocation15_spill] sm:$0xff] }
 0x1c3   :  { %v508_v35 = vmul.f32 %v2761_v23, %v3348_v5  ;;  %v723_v29 = vadd.f32 %v3382_v4, %v3784_v39  ;;  %v722_v6 = vadd.f32 %v3384_v20, %v3786_v41  ;;  %v561_v43 = vsel %vm533_vm4, %v559_v46, %v560_v9 }
 0x1c4   :  { %v409_v22 = vsel %vm376_vm3, %v407_v18, %v408_v8  ;;  %v3876_v27 = vadd.f32 %v561_v43, %v443_v28  ;;  %v568_v51 = vsel %vm533_vm4, %v565_v1, %v567_v37  ;;  %v275_v49 = vmul.f32 %v2760_v19, %v3374_v59  ;;  %v4389_v19 = vld [vmem:[#allocation10_spill] sm:$0xff] }
 0x1c5   :  { %v445_v62 = vadd.f32 %v409_v22, %v272_v50  ;;  %v3884_v21 = vadd.f32 %v568_v51, %v446_v58  ;;  %v566_v4 = vsel %vm533_vm4, %v564_v57, %v565_v1  ;;  %v911_v20 = vadd.f32 %v3494_v16, %v723_v29  ;;  %v4393_v50 = vld [vmem:[#allocation24_spill] sm:$0xff]  ;;  %v4394_v58 = vld [vmem:[#allocation53_spill] sm:$0xff]  ;;  %v4396_v29 = vld [vmem:[#allocation11_spill] sm:$0xff] }
 0x1c6   :  { %v3857_v24 = vpop.permute.xlu0 %1392  ;;  %v3859_v31 = vpop.permute.xlu1 %1390  ;;  %v910_v39 = vadd.f32 %v3496_v34, %v722_v6  ;;  %v416_v41 = vsel %vm376_vm3, %v413_v42, %v415_v52  ;;  %v570_v9 = vrot.slane %v3867_v63, 2  ;;  %v572_v8 = vrot.slane %v508_v35, 2  ;;  %v4395_v52 = vld [vmem:[#allocation54_spill] sm:$0xff]  ;;  %v4398_v51 = vld [vmem:[#allocation39_spill] sm:$0xff] }
 0x1c7   :  { %v349_v26 = vmul.f32 %v2762_v38, %v3326_v3  ;;  %v725_v2 = vadd.f32 %v4388_v48, %v3788_v33  ;;  %v724_v23 = vadd.f32 %v4389_v19, %v3791_v25  ;;  %v1099_v16 = vadd.f32 %v4390_v15, %v911_v20  ;;  %v4392_v33 = vld [vmem:[#allocation23_spill] sm:$0xff]  ;;  %v4401_v48 = vld [vmem:[#allocation25_spill] sm:$0xff] }
 0x1c8   :  { %v1098_v34 = vadd.f32 %v4391_v36, %v910_v39  ;;  %v3900_v28 = vadd.f32 %v566_v4, %v445_v62  ;;  %v448_v46 = vadd.f32 %v416_v41, %v275_v49  ;;  %v274_v18 = vmul.f32 %v2762_v38, %v3374_v59  ;;  %v4397_v59 = vld [vmem:[#allocation12_spill] sm:$0xff]  ;;  %v4400_v39 = vld [vmem:[#allocation69_spill] sm:$0xff]  ;;  %v4403_v15 = vld [vmem:[#allocation55_spill] sm:$0xff] }
 0x1c9   :  { %v3904_v53 = vmul.f32 %v2762_v38, %v3348_v5  ;;  %v913_v37 = vadd.f32 %v4392_v33, %v725_v2  ;;  %v912_v25 = vadd.f32 %v4393_v50, %v724_v23  ;;  %v1231_v57 = vadd.f32 %v4394_v58, %v1099_v16  ;;  %v4399_v49 = vld [vmem:[#allocation40_spill] sm:$0xff]  ;;  %v4402_v2 = vld [vmem:[#allocation26_spill] sm:$0xff]  ;;  %v4407_v50 = vld [vmem:[#allocation41_spill] sm:$0xff] }
 0x1ca   :  { %v3880_v13 = vpop.permute.xlu0 %1396  ;;  %v3882_v54 = vpop.permute.xlu1 %1394  ;;  %v1230_v35 = vadd.f32 %v4395_v52, %v1098_v34  ;;  %v727_v6 = vadd.f32 %v4396_v29, %v3802_v40  ;;  %v726_v43 = vadd.f32 %v4397_v59, %v3814_v11  ;;  %v573_v5 = vsel %vm533_vm4, %v570_v9, %v572_v8  ;;  %v4408_v58 = vld [vmem:[#allocation42_spill] sm:$0xff]  ;;  %v4409_v59 = vld [vmem:[#allocation27_spill] sm:$0xff] }
 0x1cb   :  { %v412_v22 = vrot.slane %v349_v26, 1  ;;  %v1101_v62 = vadd.f32 %v4398_v51, %v913_v37  ;;  %v1100_v4 = vadd.f32 %v4399_v49, %v912_v25  ;;  %v1419_v20 = vadd.f32 %v3762_v7, %v1231_v57  ;;  %v4404_v26 = vld [vmem:[#allocation56_spill] sm:$0xff]  ;;  %v4405_v7 = vld [vmem:[#allocation13_spill] sm:$0xff]  ;;  %v4412_v49 = vld [vmem:[#allocation58_spill] sm:$0xff] }
 0x1cc   :  { %v1418_v41 = vadd.f32 %v4400_v39, %v1230_v35  ;;  %v3925_v38 = vadd.f32 %v573_v5, %v448_v46  ;;  %v915_v40 = vadd.f32 %v4401_v48, %v727_v6  ;;  %v914_v19 = vadd.f32 %v4402_v2, %v726_v43  ;;  %v4406_v46 = vld [vmem:[#allocation14_spill] sm:$0xff]  ;;  %v4410_v43 = vld [vmem:[#allocation28_spill] sm:$0xff]  ;;  %v4415_v48 = vld [vmem:[#allocation43_spill] sm:$0xff] }
 0x1cd   :  { %v1233_v8 = vadd.f32 %v4403_v15, %v1101_v62  ;;  %v1232_v16 = vadd.f32 %v4404_v26, %v1100_v4  ;;  %v729_v33 = vadd.f32 %v4405_v7, %v3817_v14  ;;  %v728_v37 = vadd.f32 %v4406_v46, %v3827_v47  ;;  %v4416_v2 = vld [vmem:[#allocation44_spill] sm:$0xff]  ;;  %v4429_v63 = vld [vmem:[#allocation19_spill] sm:$0xff] }
 0x1ce   :  { %v3906_v1 = vpop.permute.xlu0 %1400  ;;  %v3908_v3 = vpop.permute.xlu1 %1398  ;;  %v1103_v25 = vadd.f32 %v4407_v50, %v915_v40  ;;  %v1102_v57 = vadd.f32 %v4408_v58, %v914_v19  ;;  %v414_v14 = vsel %vm376_vm3, %v412_v22, %v413_v42  ;;  %v4414_v42 = vld [vmem:[#allocation16_spill] sm:$0xff] }
 0x1cf   :  { %v1421_v52 = vadd.f32 %v3777_v60, %v1233_v8  ;;  %v1420_v35 = vadd.f32 %v3779_v12, %v1232_v16  ;;  %v917_v47 = vadd.f32 %v4409_v59, %v729_v33  ;;  %v916_v5 = vadd.f32 %v4410_v43, %v728_v37  ;;  %v4411_v60 = vld [vmem:[#allocation57_spill] sm:$0xff] }
 0x1d0   :  { %v1235_v12 = vadd.f32 %v4411_v60, %v1103_v25  ;;  %v1234_v4 = vadd.f32 %v4412_v49, %v1102_v57  ;;  %v730_v22 = vadd.f32 %v4414_v42, %v3861_v17  ;;  %v447_v26 = vadd.f32 %v414_v14, %v274_v18  ;;  %v4417_v16 = vld [vmem:[#allocation29_spill] sm:$0xff]  ;;  %v4418_v17 = vld [vmem:[#allocation30_spill] sm:$0xff]  ;;  %v4426_v60 = vld [vmem:[#allocation32_spill] sm:$0xff] }
 0x1d1   :  { %v1105_v40 = vadd.f32 %v4415_v48, %v917_v47  ;;  %v1104_v19 = vadd.f32 %v4416_v2, %v916_v5  ;;  %v4421_v18 = vld [vmem:[#allocation17_spill] sm:$0xff]  ;;  %v4424_v14 = vld [vmem:[#allocation46_spill] sm:$0xff]  ;;  %v735_v48 = vadd.f32 %v4429_v63, %v3884_v21  ;;  %v4431_v2 = vld [vmem:[#allocation47_spill] sm:$0xff] }
 0x1d2   :  { %v1561_v11 = vpop.permute.xlu0 %1560  ;;  %v1559_v23 = vpop.permute.xlu1 %1558  ;;  %v918_v33 = vadd.f32 %v4418_v17, %v730_v22  ;;  %v4433_v17 = vld [vmem:[#allocation33_spill] sm:$0xff] }
 0x1d3   :  { %v3931_v36 = vadd.f32 %v1561_v11, %v1419_v20  ;;  %v3933_v34 = vadd.f32 %v1559_v23, %v1418_v41  ;;  %v731_v41 = vadd.f32 %v4413_v0, %v3829_v32  ;;  %v1423_v11 = vadd.f32 %v3798_v55, %v1235_v12  ;;  %v4419_v55 = vld [vmem:[#allocation59_spill] sm:$0xff]  ;;  %v4428_v0 = vld [vmem:[#allocation62_spill] sm:$0xff] }
 0x1d4   :  { %v1422_v23 = vadd.f32 %v3800_v30, %v1234_v4  ;;  %v569_v32 = vrot.slane %v3904_v53, 2  ;;  %v1237_v50 = vadd.f32 %v4419_v55, %v1105_v40  ;;  %v4420_v30 = vld [vmem:[#allocation60_spill] sm:$0xff]  ;;  %v4422_v53 = vld [vmem:[#allocation18_spill] sm:$0xff]  ;;  %v1106_v59 = vadd.f32 %v4424_v14, %v918_v33  ;;  %v4435_v55 = vld [vmem:[#allocation63_spill] sm:$0xff] }
 0x1d5   :  { %v1626_v29 = vsel %vm1622_vm5, %v3931_v36, 0.0  ;;  %v1623_v6 = vsel %vm1622_vm5, %v3933_v34, 0.0  ;;  %v919_v7 = vadd.f32 %v4417_v16, %v731_v41  ;;  %v1236_v25 = vadd.f32 %v4420_v30, %v1104_v19  ;;  %v4434_v33 = vld [vmem:[#allocation34_spill] sm:$0xff] }
 0x1d6   :  { %v1565_v51 = vpop.permute.xlu0 %1564  ;;  %1627 = vadd.xlane.f32.xlu0 %v1626_v29  ;;  %v1563_v62 = vpop.permute.xlu1 %1562  ;;  %1624 = vadd.xlane.f32.xlu1 %v1623_v6  ;;  %v4423_v29 = vld [vmem:[#allocation45_spill] sm:$0xff]  ;;  %v1425_v47 = vadd.f32 %v3823_v10, %v1237_v50  ;;  %v1238_v41 = vadd.f32 %v4428_v0, %v1106_v59  ;;  %v923_v21 = vadd.f32 %v4433_v17, %v735_v48 }
 0x1d7   :  { %v3954_v20 = vadd.f32 %v1565_v51, %v1421_v52  ;;  %v3956_v39 = vadd.f32 %v1563_v62, %v1420_v35  ;;  %v733_v52 = vadd.f32 %v4421_v18, %v3863_v56  ;;  %v732_v35 = vadd.f32 %v4422_v53, %v3876_v27  ;;  %v4425_v62 = vld [vmem:[#allocation31_spill] sm:$0xff]  ;;  %v4427_v10 = vld [vmem:[#allocation61_spill] sm:$0xff] }
 0x1d8   :  { %v1107_v6 = vadd.f32 %v4423_v29, %v919_v7  ;;  %v1424_v43 = vadd.f32 %v3825_v45, %v1236_v25  ;;  %v571_v56 = vsel %vm533_vm4, %v569_v32, %v570_v9  ;;  %v4430_v9 = vld [vmem:[#allocation20_spill] sm:$0xff]  ;;  %v4437_v18 = vld [vmem:[#allocation21_spill] sm:$0xff] }
 0x1d9   :  { %v1629_v15 = vsel %vm1622_vm5, %v3956_v39, 0.0  ;;  %v1632_v8 = vsel %vm1622_vm5, %v3954_v20, 0.0  ;;  %v921_v27 = vadd.f32 %v4425_v62, %v733_v52  ;;  %v920_v12 = vadd.f32 %v4426_v60, %v732_v35  ;;  %v4439_v35 = vld [vmem:[#allocation49_spill] sm:$0xff]  ;;  %v4442_v62 = vld [vmem:[#allocation36_spill] sm:$0xff] }
 0x1da   :  { %v1569_v46 = vpop.permute.xlu0 %1568  ;;  %1630 = vadd.xlane.f32.xlu0 %v1629_v15  ;;  %v1567_v37 = vpop.permute.xlu1 %1566  ;;  %1633 = vadd.xlane.f32.xlu1 %v1632_v8  ;;  %v1239_v45 = vadd.f32 %v4427_v10, %v1107_v6  ;;  %v734_v40 = vadd.f32 %v4430_v9, %v3900_v28  ;;  %v1426_v8 = vadd.f32 %v3844_v44, %v1238_v41  ;;  %v4440_v6 = vld [vmem:[#allocation50_spill] sm:$0xff]  ;;  %v4446_v41 = vld [vmem:[#allocation52_spill] sm:$0xff] }
 0x1db   :  { %v3975_v58 = vadd.f32 %v1569_v46, %v1423_v11  ;;  %v3977_v57 = vadd.f32 %v1567_v37, %v1422_v23  ;;  %v1109_v19 = vadd.f32 %v4431_v2, %v921_v27  ;;  %v4432_v11 = vld [vmem:[#allocation48_spill] sm:$0xff]  ;;  %v604_v7 = vadd.f32 %v571_v56, %v447_v26  ;;  %v4438_v26 = vld [vmem:[#allocation22_spill] sm:$0xff] }
 0x1dc   :  { %v1108_v23 = vadd.f32 %v4432_v11, %v920_v12  ;;  %v1427_v15 = vadd.f32 %v3842_v61, %v1239_v45  ;;  %v922_v46 = vadd.f32 %v4434_v33, %v734_v40  ;;  %v4436_v61 = vld [vmem:[#allocation64_spill] sm:$0xff]  ;;  %v737_v52 = vadd.f32 %v4437_v18, %v3925_v38  ;;  %v4443_v12 = vld [vmem:[#allocation65_spill] sm:$0xff]  ;;  %v4445_v45 = vld [vmem:[#allocation51_spill] sm:$0xff] }
 0x1dd   :  { %v1635_v5 = vsel %vm1622_vm5, %v3977_v57, 0.0  ;;  %v1638_v51 = vsel %vm1622_vm5, %v3975_v58, 0.0  ;;  %v1241_v50 = vadd.f32 %v4435_v55, %v1109_v19  ;;  %v736_v53 = vadd.f32 %v4438_v26, %v604_v7 }
 0x1de   :  { %v1573_v49 = vpop.permute.xlu0 %1572  ;;  %1636 = vadd.xlane.f32.xlu0 %v1635_v5  ;;  %v1571_v4 = vpop.permute.xlu1 %1570  ;;  %1639 = vadd.xlane.f32.xlu1 %v1638_v51  ;;  %v1240_v30 = vadd.f32 %v4436_v61, %v1108_v23  ;;  %v1111_v29 = vadd.f32 %v4439_v35, %v923_v21  ;;  %v1110_v14 = vadd.f32 %v4440_v6, %v922_v46  ;;  %v4441_v51 = vld [vmem:[#allocation35_spill] sm:$0xff] }
 0x1df   :  { %v3998_v42 = vadd.f32 %v1573_v49, %v1425_v47  ;;  %v4000_v22 = vadd.f32 %v1571_v4, %v1424_v43  ;;  %v1429_v59 = vadd.f32 %v3857_v24, %v1241_v50  ;;  %v925_v56 = vadd.f32 %v4441_v51, %v737_v52  ;;  %v4444_v4 = vld [vmem:[#allocation66_spill] sm:$0xff]  ;;  %v4447_v23 = vld [vmem:[#allocation67_spill] sm:$0xff] }
 0x1e0   :  { %v1428_v47 = vadd.f32 %v3859_v31, %v1240_v30  ;;  %v924_v38 = vadd.f32 %v4442_v62, %v736_v53  ;;  %v1243_v49 = vadd.f32 %v4443_v12, %v1111_v29  ;;  %v1242_v24 = vadd.f32 %v4444_v4, %v1110_v14 }
 0x1e1   :  { %v1641_v32 = vsel %vm1622_vm5, %v4000_v22, 0.0  ;;  %v1644_v16 = vsel %vm1622_vm5, %v3998_v42, 0.0  ;;  %v1113_v0 = vadd.f32 %v4445_v45, %v925_v56  ;;  %v1736_v50 = vmul.f32 %v3931_v36, %v3931_v36 }
 0x1e2   :  { %v1577_v28 = vpop.permute.xlu0 %1576  ;;  %1642 = vadd.xlane.f32.xlu0 %v1641_v32  ;;  %v1575_v37 = vpop.permute.xlu1 %1574  ;;  %1645 = vadd.xlane.f32.xlu1 %v1644_v16  ;;  %v1112_v63 = vadd.f32 %v4446_v41, %v924_v38  ;;  %v1431_v48 = vadd.f32 %v3880_v13, %v1243_v49  ;;  %v1430_v9 = vadd.f32 %v3882_v54, %v1242_v24 }
 0x1e3   :  { %v4018_v44 = vadd.f32 %v1577_v28, %v1427_v15  ;;  %v4020_v25 = vadd.f32 %v1575_v37, %v1426_v8  ;;  %v1245_v15 = vadd.f32 %v4447_v23, %v1113_v0  ;;  %v4448_v8 = vld [vmem:[#allocation68_spill] sm:$0xff]  ;;  %v1754_v30 = vsel %vm1622_vm5, %v1736_v50, 0.0 }
 0x1e4   :  { %v1244_v32 = vadd.f32 %v4448_v8, %v1112_v63  ;;  %v1737_v18 = vmul.f32 %v3956_v39, %v3956_v39  ;;  %v1738_v52 = vmul.f32 %v3954_v20, %v3954_v20  ;;  %v1739_v35 = vmul.f32 %v3977_v57, %v3977_v57 }
 0x1e5   :  { %v1647_v43 = vsel %vm1622_vm5, %v4020_v25, 0.0  ;;  %v1650_v5 = vsel %vm1622_vm5, %v4018_v44, 0.0  ;;  %v1433_v13 = vadd.f32 %v3906_v1, %v1245_v15  ;;  %v1740_v29 = vmul.f32 %v3975_v58, %v3975_v58 }
 0x1e6   :  { %v1581_v27 = vpop.permute.xlu0 %1580  ;;  %1648 = vadd.xlane.f32.xlu0 %v1647_v43  ;;  %v1579_v60 = vpop.permute.xlu1 %1578  ;;  %1651 = vadd.xlane.f32.xlu1 %v1650_v5  ;;  %v1432_v54 = vadd.f32 %v3908_v3, %v1244_v32  ;;  %v1735_v3 = vmul.f32 %v3933_v34, %v3933_v34  ;;  %v1757_v26 = vsel %vm1622_vm5, %v1737_v18, 0.0  ;;  %v1760_v53 = vsel %vm1622_vm5, %v1738_v52, 0.0 }
 0x1e7   :  { %v4037_v10 = vadd.f32 %v1581_v27, %v1429_v59  ;;  %v4039_v31 = vadd.f32 %v1579_v60, %v1428_v47  ;;  %v1763_v6 = vsel %vm1622_vm5, %v1739_v35, 0.0  ;;  %v1766_v14 = vsel %vm1622_vm5, %v1740_v29, 0.0 }
 0x1e8   :  { %v1751_v61 = vsel %vm1622_vm5, %v1735_v3, 0.0  ;;  %v1741_v59 = vmul.f32 %v4000_v22, %v4000_v22  ;;  %v1742_v47 = vmul.f32 %v3998_v42, %v3998_v42  ;;  %v1743_v51 = vmul.f32 %v4020_v25, %v4020_v25 }
 0x1e9   :  { %v1653_v40 = vsel %vm1622_vm5, %v4039_v31, 0.0  ;;  %v1656_v2 = vsel %vm1622_vm5, %v4037_v10, 0.0  ;;  %v1744_v56 = vmul.f32 %v4018_v44, %v4018_v44  ;;  %v1745_v27 = vmul.f32 %v4039_v31, %v4039_v31 }
 0x1ea   :  { %v1585_v19 = vpop.permute.xlu0 %1584  ;;  %1654 = vadd.xlane.f32.xlu0 %v1653_v40  ;;  %v1583_v11 = vpop.permute.xlu1 %1582  ;;  %1657 = vadd.xlane.f32.xlu1 %v1656_v2  ;;  %v1769_v43 = vsel %vm1622_vm5, %v1741_v59, 0.0  ;;  %v1772_v5 = vsel %vm1622_vm5, %v1742_v47, 0.0  ;;  %v1775_v62 = vsel %vm1622_vm5, %v1743_v51, 0.0  ;;  %v1746_v60 = vmul.f32 %v4037_v10, %v4037_v10 }
 0x1eb   :  { %v4051_v16 = vadd.f32 %v1585_v19, %v1431_v48  ;;  %v4053_v7 = vadd.f32 %v1583_v11, %v1430_v9  ;;  %v1778_v38 = vsel %vm1622_vm5, %v1744_v56, 0.0  ;;  %v1781_v12 = vsel %vm1622_vm5, %v1745_v27, 0.0 }
 0x1ec   :  { %v1784_v49 = vsel %vm1622_vm5, %v1746_v60, 0.0 }
 0x1ed   :  { %v1659_v17 = vsel %vm1622_vm5, %v4053_v7, 0.0  ;;  %v1662_v21 = vsel %vm1622_vm5, %v4051_v16, 0.0  ;;  %v1747_v4 = vmul.f32 %v4053_v7, %v4053_v7  ;;  %v1748_v24 = vmul.f32 %v4051_v16, %v4051_v16 }
 0x1ee   :  { %v1589_v33 = vpop.permute.xlu0 %1588  ;;  %1660 = vadd.xlane.f32.xlu0 %v1659_v17  ;;  %v1587_v46 = vpop.permute.xlu1 %1586  ;;  %1663 = vadd.xlane.f32.xlu1 %v1662_v21 }
 0x1ef   :  { %v4061_v28 = vadd.f32 %v1589_v33, %v1433_v13  ;;  %v4063_v37 = vadd.f32 %v1587_v46, %v1432_v54  ;;  %v1787_v45 = vsel %vm1622_vm5, %v1747_v4, 0.0  ;;  %v1790_v0 = vsel %vm1622_vm5, %v1748_v24, 0.0 }
 0x1f1   :  { %v1665_v55 = vsel %vm1622_vm5, %v4063_v37, 0.0  ;;  %v1668_v1 = vsel %vm1622_vm5, %v4061_v28, 0.0  ;;  %v1749_v41 = vmul.f32 %v4063_v37, %v4063_v37  ;;  %v1750_v63 = vmul.f32 %v4061_v28, %v4061_v28 }
 0x1f2   :  { %1666 = vadd.xlane.f32.xlu0 %v1665_v55  ;;  %1669 = vadd.xlane.f32.xlu1 %v1668_v1 }
 0x1f3   :  { %v1793_v48 = vsel %vm1622_vm5, %v1749_v41, 0.0  ;;  %v1796_v9 = vsel %vm1622_vm5, %v1750_v63, 0.0 }
 0x1f6   :  { %1752 = vadd.xlane.f32.xlu0 %v1751_v61  ;;  %1755 = vadd.xlane.f32.xlu1 %v1754_v30 }
 0x1fa   :  { %1758 = vadd.xlane.f32.xlu0 %v1757_v26  ;;  %1761 = vadd.xlane.f32.xlu1 %v1760_v53 }
 0x1fe   :  { %1764 = vadd.xlane.f32.xlu0 %v1763_v6  ;;  %1767 = vadd.xlane.f32.xlu1 %v1766_v14 }
 0x202   :  { %1770 = vadd.xlane.f32.xlu0 %v1769_v43  ;;  %1773 = vadd.xlane.f32.xlu1 %v1772_v5 }
 0x206   :  { %1776 = vadd.xlane.f32.xlu0 %v1775_v62  ;;  %1779 = vadd.xlane.f32.xlu1 %v1778_v38 }
 0x20a   :  { %1782 = vadd.xlane.f32.xlu0 %v1781_v12  ;;  %1785 = vadd.xlane.f32.xlu1 %v1784_v49 }
 0x20e   :  { %1788 = vadd.xlane.f32.xlu0 %v1787_v45  ;;  %1791 = vadd.xlane.f32.xlu1 %v1790_v0 }
 0x212   :  { %1794 = vadd.xlane.f32.xlu0 %v1793_v48  ;;  %1797 = vadd.xlane.f32.xlu1 %v1796_v9 }
 0x263   :  { %v1628_v40 = vpop.xlane.xlu0 %1627  ;;  %v1625_v2 = vpop.xlane.xlu1 %1624 }
 0x264   :  { %v1671_v1 = vadd.f32 %v1628_v40, %v1625_v2 }
 0x266   :  { %v1672_v18 = vrot.slane %v1671_v1, 4 }
 0x267   :  { %v1631_v19 = vpop.xlane.xlu0 %1630  ;;  %v1634_v11 = vpop.xlane.xlu1 %1633 }
 0x268   :  { %v1678_v52 = vadd.f32 %v1634_v11, %v1631_v19  ;;  %v1673_v59 = vadd.f32 %v1672_v18, %v1671_v1 }
 0x26a   :  { %v1679_v47 = vrot.slane %v1678_v52, 4  ;;  %v1674_v60 = vrot.slane %v1673_v59, 2 }
 0x26b   :  { %v1637_v23 = vpop.xlane.xlu0 %1636  ;;  %v1640_v15 = vpop.xlane.xlu1 %1639 }
 0x26c   :  { %v1685_v35 = vadd.f32 %v1640_v15, %v1637_v23  ;;  %v1680_v12 = vadd.f32 %v1679_v47, %v1678_v52  ;;  %v1675_v2 = vadd.f32 %v1674_v60, %v1673_v59 }
 0x26e   :  { %v1686_v56 = vrot.slane %v1685_v35, 4  ;;  %v1681_v19 = vrot.slane %v1680_v12, 2 }
 0x26f   :  { %v1643_v8 = vpop.xlane.xlu0 %1642  ;;  %v1646_v32 = vpop.xlane.xlu1 %1645 }
 0x270   :  { %v1687_v41 = vadd.f32 %v1686_v56, %v1685_v35  ;;  %v1692_v63 = vadd.f32 %v1646_v32, %v1643_v8 }
 0x273   :  { %v1649_v13 = vpop.xlane.xlu0 %1648  ;;  %v1652_v54 = vpop.xlane.xlu1 %1651 }
 0x274   :  { %v1699_v55 = vadd.f32 %v1652_v54, %v1649_v13 }
 0x276   :  { %v1700_v61 = vrot.slane %v1699_v55, 4 }
 0x277   :  { %v1655_v17 = vpop.xlane.xlu0 %1654  ;;  %v1658_v21 = vpop.xlane.xlu1 %1657 }
 0x278   :  { %v1706_v30 = vadd.f32 %v1658_v21, %v1655_v17  ;;  %v1701_v29 = vadd.f32 %v1700_v61, %v1699_v55  ;;  %v1688_v21 = vrot.slane %v1687_v41, 2 }
 0x27a   :  { %v1707_v6 = vrot.slane %v1706_v30, 4  ;;  %v1702_v62 = vrot.slane %v1701_v29, 2 }
 0x27b   :  { %v1661_v33 = vpop.xlane.xlu0 %1660  ;;  %v1664_v46 = vpop.xlane.xlu1 %1663 }
 0x27c   :  { %v1713_v14 = vadd.f32 %v1664_v46, %v1661_v33  ;;  %v1708_v38 = vadd.f32 %v1707_v6, %v1706_v30  ;;  %v1703_v48 = vadd.f32 %v1702_v62, %v1701_v29  ;;  %v1693_v33 = vrot.slane %v1692_v63, 4 }
 0x27e   :  { %v1714_v27 = vrot.slane %v1713_v14, 4  ;;  %v1709_v9 = vrot.slane %v1708_v38, 2  ;;  %v1704_v46 = vrot.slane %v1703_v48, 1  ;;  %v1694_v29 = vadd.f32 %v1693_v33, %v1692_v63 }
 0x27f   :  { %v1667_v3 = vpop.xlane.xlu0 %1666  ;;  %v1670_v50 = vpop.xlane.xlu1 %1669 }
 0x280   :  { %v1720_v49 = vadd.f32 %v1670_v50, %v1667_v3  ;;  %v1715_v40 = vadd.f32 %v1714_v27, %v1713_v14  ;;  %v1710_v55 = vadd.f32 %v1709_v9, %v1708_v38  ;;  %v1676_v3 = vrot.slane %v1675_v2, 1 }
 0x281   :  { %v1682_v50 = vadd.f32 %v1681_v19, %v1680_v12  ;;  %v1705_v6 = vadd.f32 %v1704_v46, %v1703_v48 }
 0x282   :  { %v1721_v11 = vrot.slane %v1720_v49, 4  ;;  %v1716_v1 = vrot.slane %v1715_v40, 2  ;;  %v1711_v14 = vrot.slane %v1710_v55, 1  ;;  %v1677_v47 = vadd.f32 %v1676_v3, %v1675_v2 }
 0x283   :  { %v1753_v26 = vpop.xlane.xlu0 %1752  ;;  %v1756_v53 = vpop.xlane.xlu1 %1755 }
 0x284   :  { %v1799_v43 = vadd.f32 %v1756_v53, %v1753_v26  ;;  %v1722_v61 = vadd.f32 %v1721_v11, %v1720_v49  ;;  %v1689_v53 = vadd.f32 %v1688_v21, %v1687_v41  ;;  %v1717_v59 = vadd.f32 %v1716_v1, %v1715_v40 }
 0x285   :  { %v1712_v41 = vadd.f32 %v1711_v14, %v1710_v55 }
 0x286   :  { %v1800_v4 = vrot.slane %v1799_v43, 4  ;;  %v1690_v49 = vrot.slane %v1689_v53, 1  ;;  %v1718_v63 = vrot.slane %v1717_v59, 1 }
 0x287   :  { %v1759_v5 = vpop.xlane.xlu0 %1758  ;;  %v1762_v51 = vpop.xlane.xlu1 %1761 }
 0x288   :  { %v1806_v24 = vadd.f32 %v1762_v51, %v1759_v5  ;;  %v1801_v23 = vadd.f32 %v1800_v4, %v1799_v43  ;;  %v1683_v43 = vrot.slane %v1682_v50, 1  ;;  %v1723_v5 = vrot.slane %v1722_v61, 2 }
 0x289   :  { %v1719_v55 = vadd.f32 %v1718_v63, %v1717_v59 }
 0x28a   :  { %v1807_v15 = vrot.slane %v1806_v24, 4  ;;  %v1802_v8 = vrot.slane %v1801_v23, 2  ;;  %v1684_v48 = vadd.f32 %v1683_v43, %v1682_v50  ;;  %v1724_v9 = vadd.f32 %v1723_v5, %v1722_v61 }
 0x28b   :  { %v1765_v45 = vpop.xlane.xlu0 %1764  ;;  %v1768_v0 = vpop.xlane.xlu1 %1767 }
 0x28c   :  { %v1813_v13 = vadd.f32 %v1768_v0, %v1765_v45  ;;  %v1808_v32 = vadd.f32 %v1807_v15, %v1806_v24  ;;  %v1803_v56 = vadd.f32 %v1802_v8, %v1801_v23  ;;  %v1695_v45 = vrot.slane %v1694_v29, 2 }
 0x28d   :  { %v1727_v0 = vadd.f32 %v1705_v6, %v1677_v47  ;;  %v1728_v8 = vadd.f32 %v1712_v41, %v1684_v48 }
 0x28e   :  { %v1814_v30 = vrot.slane %v1813_v13, 4  ;;  %v1809_v62 = vrot.slane %v1808_v32, 2  ;;  %v1804_v19 = vrot.slane %v1803_v56, 1  ;;  %v1696_v1 = vadd.f32 %v1695_v45, %v1694_v29 }
 0x28f   :  { %v1771_v54 = vpop.xlane.xlu0 %1770  ;;  %v1774_v17 = vpop.xlane.xlu1 %1773  ;;  %v4117_v3 = vmul.f32 0.001953125, %v1727_v0 }
 0x290   :  { %v1820_v18 = vadd.f32 %v1774_v17, %v1771_v54  ;;  %v1815_v38 = vadd.f32 %v1814_v30, %v1813_v13  ;;  %v1810_v11 = vadd.f32 %v1809_v62, %v1808_v32  ;;  %v1691_v17 = vadd.f32 %v1690_v49, %v1689_v53 }
 0x291   :  { %v1725_v30 = vrot.slane %v1724_v9, 1  ;;  %v1863_v29 = vmul.f32 %v4117_v3, %v4117_v3  ;;  %v4121_v62 = vmul.f32 0.001953125, %v1728_v8 }
 0x292   :  { %v1821_v27 = vrot.slane %v1820_v18, 4  ;;  %v1816_v15 = vrot.slane %v1815_v38, 2  ;;  %v1729_v59 = vadd.f32 %v1719_v55, %v1691_v17 }
 0x293   :  { %v1777_v52 = vpop.xlane.xlu0 %1776  ;;  %v1780_v26 = vpop.xlane.xlu1 %1779  ;;  %v1726_v49 = vadd.f32 %v1725_v30, %v1724_v9 }
 0x294   :  { %v1827_v35 = vadd.f32 %v1780_v26, %v1777_v52  ;;  %v1822_v23 = vadd.f32 %v1821_v27, %v1820_v18  ;;  %v1805_v26 = vadd.f32 %v1804_v19, %v1803_v56  ;;  %v1817_v32 = vadd.f32 %v1816_v15, %v1815_v38 }
 0x296   :  { %v1828_v51 = vrot.slane %v1827_v35, 4  ;;  %v1823_v6 = vrot.slane %v1822_v23, 2 }
 0x297   :  { %v1783_v60 = vpop.xlane.xlu0 %1782  ;;  %v1786_v12 = vpop.xlane.xlu1 %1785 }
 0x298   :  { %v1829_v4 = vadd.f32 %v1828_v51, %v1827_v35  ;;  %v1834_v24 = vadd.f32 %v1786_v12, %v1783_v60  ;;  %v1811_v35 = vrot.slane %v1810_v11, 1  ;;  %v1697_v51 = vrot.slane %v1696_v1, 1 }
 0x29a   :  { %v1830_v40 = vrot.slane %v1829_v4, 2  ;;  %v1835_v2 = vrot.slane %v1834_v24, 4  ;;  %v1812_v38 = vadd.f32 %v1811_v35, %v1810_v11  ;;  %v1698_v48 = vadd.f32 %v1697_v51, %v1696_v1 }
 0x29b   :  { %v1789_v54 = vpop.xlane.xlu0 %1788  ;;  %v1792_v13 = vpop.xlane.xlu1 %1791 }
 0x29c   :  { %v1831_v21 = vadd.f32 %v1830_v40, %v1829_v4  ;;  %v1836_v33 = vadd.f32 %v1835_v2, %v1834_v24  ;;  %v1841_v46 = vadd.f32 %v1792_v13, %v1789_v54  ;;  %v1818_v4 = vrot.slane %v1817_v32, 1 }
 0x29d   :  { %v1824_v24 = vadd.f32 %v1823_v6, %v1822_v23  ;;  %v1864_v40 = vmul.f32 %v4121_v62, %v4121_v62  ;;  %v1733_v13 = vmul.f32 0.001953125, %v1729_v59  ;;  %v1730_v17 = vadd.f32 %v1726_v49, %v1698_v48 }
 0x29e   :  { %v1832_v50 = vrot.slane %v1831_v21, 1  ;;  %v1837_v61 = vrot.slane %v1836_v33, 2  ;;  %v1842_v52 = vrot.slane %v1841_v46, 4 }
 0x29f   :  { %v1795_v18 = vpop.xlane.xlu0 %1794  ;;  %v1798_v14 = vpop.xlane.xlu1 %1797  ;;  %v1865_v1 = vmul.f32 %v1733_v13, %v1733_v13 }
 0x2a0   :  { %v1833_v47 = vadd.f32 %v1832_v50, %v1831_v21  ;;  %v1838_v53 = vadd.f32 %v1837_v61, %v1836_v33  ;;  %v1843_v43 = vadd.f32 %v1842_v52, %v1841_v46  ;;  %v1848_v5 = vadd.f32 %v1798_v14, %v1795_v18 }
 0x2a1   :  { %v1819_v21 = vadd.f32 %v1818_v4, %v1817_v32  ;;  %v1825_v33 = vrot.slane %v1824_v24, 1  ;;  %v1734_v61 = vmul.f32 0.001953125, %v1730_v17  ;;  %v1907_v18 = vlaneseq  ;;  %v1876_v4 = vld [vmem:[%s4317_s2 + $0x1] sm:$0x1] }
 0x2a2   :  { %v1855_v27 = vadd.f32 %v1833_v47, %v1805_v26  ;;  %v1839_v60 = vrot.slane %v1838_v53, 1  ;;  %v1844_v12 = vrot.slane %v1843_v43, 2  ;;  %v1849_v56 = vrot.slane %v1848_v5, 4 }
 0x2a3   :  { %v1826_v52 = vadd.f32 %v1825_v33, %v1824_v24  ;;  %v4125_v51 = vshrl.u32 %v1907_v18, 7 }
 0x2a4   :  { %v1859_v45 = vmul.f32 0.001953125, %v1855_v27  ;;  %v1840_v0 = vadd.f32 %v1839_v60, %v1838_v53  ;;  %v1845_v41 = vadd.f32 %v1844_v12, %v1843_v43  ;;  %v1850_v63 = vadd.f32 %v1849_v56, %v1848_v5  ;;  %v1875_v60 = vld [vmem:[%s4317_s2] sm:$0x1] }
 0x2a5   :  { %v1866_v53 = vmul.f32 %v1734_v61, %v1734_v61  ;;  %v1909_v12 = vsub.s32 0, %v4125_v51 }
 0x2a6   :  { %v1867_v2 = vsub.f32 %v1859_v45, %v1863_v29  ;;  %v1856_v19 = vadd.f32 %v1840_v0, %v1812_v38  ;;  %v1846_v15 = vrot.slane %v1845_v41, 1  ;;  %v1851_v54 = vrot.slane %v1850_v63, 2 }
 0x2a8   :  { %v1871_v9 = vmax.f32 %v1867_v2, 0.0  ;;  %v1860_v11 = vmul.f32 0.001953125, %v1856_v19  ;;  %v1847_v46 = vadd.f32 %v1846_v15, %v1845_v41  ;;  %v1852_v23 = vadd.f32 %v1851_v54, %v1850_v63  ;;  %v1877_v41 = vld [vmem:[%s4317_s2 + $0x2] sm:$0x1]  ;;  %v1878_v54 = vld [vmem:[%s4317_s2 + $0x3] sm:$0x1] }
 0x2aa   :  { %v1879_v8 = vadd.f32 1e-05, %v1871_v9  ;;  %v1868_v55 = vsub.f32 %v1860_v11, %v1864_v40  ;;  %v1857_v30 = vadd.f32 %v1847_v46, %v1819_v21  ;;  %v1853_v50 = vrot.slane %v1852_v23, 1  ;;  %v1891_v40 = vld [vmem:[%s4318_s3] sm:$0x1] }
 0x2ab   :  { %v1892_v11 = vld [vmem:[%s4318_s3 + $0x1] sm:$0x1] }
 0x2ac   :  { %2734 = vrsqrt.f32 %v1879_v8  ;;  %v1872_v26 = vmax.f32 %v1868_v55, 0.0  ;;  %v1861_v35 = vmul.f32 0.001953125, %v1857_v30  ;;  %v1854_v6 = vadd.f32 %v1853_v50, %v1852_v23 }
 0x2ae   :  { %v1880_v14 = vadd.f32 1e-05, %v1872_v26  ;;  %v1869_v47 = vsub.f32 %v1861_v35, %v1865_v1  ;;  %v1858_v32 = vadd.f32 %v1854_v6, %v1826_v52  ;;  %v2819_v6 = vmov 1983009808  }
 0x2af   :  { %v2026_v18 = vunpack.c.l.s4 %v2819_v6 }
 0x2b0   :  { %2736 = vrsqrt.f32 %v1880_v14  ;;  %v1873_v43 = vmax.f32 %v1869_v47, 0.0  ;;  %v1862_v5 = vmul.f32 0.001953125, %v1858_v32  ;;  %v2820_v32 = vmov 1934713408  }
 0x2b2   :  { %v1881_v29 = vadd.f32 1e-05, %v1873_v43  ;;  %v1870_v59 = vsub.f32 %v1862_v5, %v1866_v53  ;;  %v2027_v53 = vunpack.c.0.s8 %v2026_v18 }
 0x2b4   :  { %2738 = vrsqrt.f32 %v1881_v29  ;;  %v1874_v27 = vmax.f32 %v1870_v59, 0.0 }
 0x2b6   :  { %v2735_v56 = vpop.eup %2734  ;;  %v1882_v49 = vadd.f32 1e-05, %v1874_v27  ;;  %v4156_v27 = vsub.s32 %v2027_v53, %v4125_v51 }
 0x2b7   :  { %v1887_v38 = vmul.f32 %v2735_v56, %v1875_v60 }
 0x2b8   :  { %2740 = vrsqrt.f32 %v1882_v49 }
 0x2b9   :  { %v1910_v24 = vrot.slane %v1887_v38, %v1909_v12  ;;  %v1895_v63 = vmul.f32 %v1887_v38, %v4117_v3  ;;  %v1893_v3 = vld [vmem:[%s4318_s3 + $0x2] sm:$0x1] }
 0x2ba   :  { %v2737_v45 = vpop.eup %2736 }
 0x2bb   :  { %1924 = vperm.xlu0 %2732, %v1910_v24   ;;  %v1888_v0 = vmul.f32 %v2737_v45, %v1876_v4  ;;  %v1899_v15 = vsub.f32 %v1891_v40, %v1895_v63 }
 0x2bd   :  { %v1914_v48 = vrot.slane %v1888_v0, %v1909_v12  ;;  %v1896_v33 = vmul.f32 %v1888_v0, %v4121_v62  ;;  %v1962_v23 = vrot.slane %v1899_v15, %v1909_v12  ;;  %v1894_v62 = vld [vmem:[%s4318_s3 + $0x3] sm:$0x1]  ;;  %s2821_s3 = smov 32  }
 0x2be   :  { %v2739_v2 = vpop.eup %2738 }
 0x2bf   :  { %1928 = vperm.xlu1 %2733, %v1914_v48   ;;  %v1889_v19 = vmul.f32 %v2739_v2, %v1877_v41  ;;  %v1900_v30 = vsub.f32 %v1892_v11, %v1896_v33 }
 0x2c1   :  { %v1918_v17 = vrot.slane %v1889_v19, %v1909_v12  ;;  %v1897_v21 = vmul.f32 %v1889_v19, %v1733_v13  ;;  %v1966_v1 = vrot.slane %v1900_v30, %v1909_v12 }
 0x2c2   :  { %v2741_v9 = vpop.eup %2740 }
 0x2c3   :  { %1932 = vperm.xlu1 %2733, %v1918_v17   ;;  %v1890_v46 = vmul.f32 %v2741_v9, %v1878_v54  ;;  %v1901_v55 = vsub.f32 %v1893_v3, %v1897_v21 }
 0x2c5   :  { %v1922_v8 = vrot.slane %v1890_v46, %v1909_v12  ;;  %v1898_v50 = vmul.f32 %v1890_v46, %v1734_v61  ;;  %v1970_v13 = vrot.slane %v1901_v55, %v1909_v12  ;;  %v2058_v61 = vunpack.c.l.s4 %v2820_v32 }
 0x2c7   :  { %1976 = vperm.xlu1 %2733, %v1962_v23   ;;  %1936 = vperm.xlu0 %2732, %v1922_v8   ;;  %v1902_v52 = vsub.f32 %v1894_v62, %v1898_v50  ;;  %v2059_v29 = vunpack.c.0.s8 %v2058_v61 }
 0x2c9   :  { %v1974_v26 = vrot.slane %v1902_v52, %v1909_v12 }
 0x2cb   :  { %1984 = vperm.xlu1 %2733, %v1970_v13   ;;  %1980 = vperm.xlu0 %2732, %v1966_v1  }
 0x2cf   :  { %1988 = vperm.xlu0 %2732, %v1974_v26  }
 0x33a   :  { %v1925_v14 = vpop.permute.xlu0 %1924 }
 0x33b   :  { %v1939_v59 = vmul.f32 %v1925_v14, %v3933_v34  ;;  %v1940_v60 = vmul.f32 %v1925_v14, %v3931_v36  ;;  %v1947_v12 = vmul.f32 %v1925_v14, %v4020_v25  ;;  %v1948_v56 = vmul.f32 %v1925_v14, %v4018_v44 }
 0x33e   :  { %v1929_v35 = vpop.permute.xlu1 %1928 }
 0x33f   :  { %v1941_v49 = vmul.f32 %v1929_v35, %v3956_v39  ;;  %v1942_v34 = vmul.f32 %v1929_v35, %v3954_v20  ;;  %v1949_v41 = vmul.f32 %v1929_v35, %v4039_v31  ;;  %v1950_v63 = vmul.f32 %v1929_v35, %v4037_v10 }
 0x342   :  { %v1933_v47 = vpop.permute.xlu1 %1932 }
 0x343   :  { %v1943_v38 = vmul.f32 %v1933_v47, %v3977_v57  ;;  %v1944_v4 = vmul.f32 %v1933_v47, %v3975_v58  ;;  %v1951_v36 = vmul.f32 %v1933_v47, %v4053_v7  ;;  %v1952_v25 = vmul.f32 %v1933_v47, %v4051_v16 }
 0x346   :  { %v1937_v43 = vpop.permute.xlu0 %1936  ;;  %v1977_v5 = vpop.permute.xlu1 %1976 }
 0x347   :  { %v1991_v24 = vadd.f32 %v1977_v5, %v1939_v59  ;;  %v1945_v44 = vmul.f32 %v1937_v43, %v4000_v22  ;;  %v1946_v57 = vmul.f32 %v1937_v43, %v3998_v42  ;;  %v1953_v58 = vmul.f32 %v1937_v43, %v4063_v37 }
 0x348   :  { %v1954_v40 = vmul.f32 %v1937_v43, %v4061_v28  ;;  %v1992_v2 = vadd.f32 %v1977_v5, %v1940_v60  ;;  %v4173_v20 = vadd.f32 %v1977_v5, %v1947_v12  ;;  %v2000_v31 = vadd.f32 %v1977_v5, %v1948_v56 }
 0x349   :  { %v2007_v19 = vmax.f32 %v1991_v24, 0.0  ;;  %v4176_v28 = vsub.s32 %v2059_v29, %v4125_v51 }
 0x34a   :  { %v1981_v45 = vpop.permute.xlu0 %1980  ;;  %v1985_v0 = vpop.permute.xlu1 %1984  ;;  %v2008_v42 = vmax.f32 %v1992_v2, 0.0  ;;  %v2015_v46 = vmax.f32 %v4173_v20, 0.0  ;;  %v2016_v23 = vmax.f32 %v2000_v31, 0.0 }
 0x34b   :  { %v1995_v39 = vadd.f32 %v1985_v0, %v1943_v38  ;;  %v1996_v48 = vadd.f32 %v1985_v0, %v1944_v4  ;;  %v2004_v10 = vadd.f32 %v1985_v0, %v1952_v25  ;;  %v1993_v7 = vadd.f32 %v1981_v45, %v1941_v49 }
 0x34c   :  { %v1994_v54 = vadd.f32 %v1981_v45, %v1942_v34  ;;  %v2001_v3 = vadd.f32 %v1981_v45, %v1949_v41  ;;  %v2002_v37 = vadd.f32 %v1981_v45, %v1950_v63  ;;  %v2003_v11 = vadd.f32 %v1985_v0, %v1951_v36 }
 0x34d   :  { %v2011_v16 = vmax.f32 %v1995_v39, 0.0  ;;  %v2012_v17 = vmax.f32 %v1996_v48, 0.0  ;;  %v2020_v8 = vmax.f32 %v2004_v10, 0.0  ;;  %v2009_v55 = vmax.f32 %v1993_v7, 0.0 }
 0x34e   :  { %v1989_v15 = vpop.permute.xlu0 %1988  ;;  %v2010_v30 = vmax.f32 %v1994_v54, 0.0  ;;  %v2017_v35 = vmax.f32 %v2001_v3, 0.0  ;;  %v2018_v6 = vmax.f32 %v2002_v37, 0.0  ;;  %v2019_v18 = vmax.f32 %v2003_v11, 0.0 }
 0x34f   :  { %v1997_v22 = vadd.f32 %v1989_v15, %v1945_v44  ;;  %v1998_v21 = vadd.f32 %v1989_v15, %v1946_v57  ;;  %v2005_v33 = vadd.f32 %v1989_v15, %v1953_v58  ;;  %v2006_v9 = vadd.f32 %v1989_v15, %v1954_v40 }
 0x350   :  { %v2023_v50 = vcombine.low %v2007_v19, %v2011_v16  ;;  %v2091_v62 = vcombine.low %v2008_v42, %v2012_v17  ;;  %v2092_v14 = vcombine.high %v2008_v42, %v2012_v17  ;;  %v2227_v47 = vcombine.low %v2016_v23, %v2020_v8 }
 0x351   :  { %v2013_v13 = vmax.f32 %v1997_v22, 0.0  ;;  %v2014_v1 = vmax.f32 %v1998_v21, 0.0  ;;  %v2021_v52 = vmax.f32 %v2005_v33, 0.0  ;;  %v2022_v26 = vmax.f32 %v2006_v9, 0.0 }
 0x352   :  { %v4180_v53 = vrot.slane %v2023_v50, %v4156_v27  ;;  %v2099_v59 = vrot.slane %v2091_v62, %v4156_v27  ;;  %v2024_v49 = vcombine.high %v2007_v19, %v2011_v16  ;;  %v2159_v38 = vcombine.low %v2015_v46, %v2019_v18 }
 0x353   :  { %v2039_v32 = vcombine.low %v2009_v55, %v2013_v13  ;;  %v2107_v51 = vcombine.low %v2010_v30, %v2014_v1  ;;  %v2108_v61 = vcombine.high %v2010_v30, %v2014_v1  ;;  %v2040_v43 = vcombine.high %v2009_v55, %v2013_v13 }
 0x354   :  { %v2175_v5 = vcombine.low %v2017_v35, %v2021_v52  ;;  %v2243_v29 = vcombine.low %v2018_v6, %v2022_v26  ;;  %v2106_v24 = vrot.slane %v2092_v14, %v4156_v27  ;;  %v4191_v45 = vrot.slane %v2227_v47, %v4156_v27 }
 0x355   :  { %v2047_v60 = vrot.slane %v2039_v32, %v4156_v27  ;;  %v2115_v12 = vrot.slane %v2107_v51, %v4156_v27  ;;  %v2122_v56 = vrot.slane %v2108_v61, %v4156_v27  ;;  %v2054_v41 = vrot.slane %v2040_v43, %v4156_v27 }
 0x356   :  { %v4187_v4 = vrot.slane %v2243_v29, %v4156_v27  ;;  %v4196_v63 = vrot.slane %v2175_v5, %v4156_v27  ;;  %v2244_v36 = vcombine.high %v2018_v6, %v2022_v26  ;;  %v2038_v57 = vrot.slane %v2024_v49, %v4156_v27 }
 0x357   :  { %v2124_v0 = vcombine.high %v2099_v59, %v2115_v12  ;;  %v2056_v34 = vcombine.high %v4180_v53, %v2047_v60  ;;  %v2139_v48 = vcombine.low %v2106_v24, %v2122_v56  ;;  %v2167_v58 = vrot.slane %v2159_v38, %v4156_v27 }
 0x358   :  { %v2260_v39 = vcombine.high %v4191_v45, %v4187_v4  ;;  %v2228_v40 = vcombine.high %v2016_v23, %v2020_v8  ;;  %v2176_v2 = vcombine.high %v2017_v35, %v2021_v52  ;;  %v2258_v20 = vrot.slane %v2244_v36, %v4156_v27 }
 0x359   :  { %v2138_v25 = vrot.slane %v2124_v0, %v4176_v28  ;;  %v2070_v44 = vrot.slane %v2056_v34, %v4176_v28  ;;  %v2147_v19 = vrot.slane %v2139_v48, %v4176_v28  ;;  %v2192_v10 = vcombine.high %v2167_v58, %v4196_v63 }
 0x35a   :  { %v2274_v31 = vrot.slane %v2260_v39, %v4176_v28  ;;  %v2071_v15 = vcombine.low %v2038_v57, %v2054_v41  ;;  %v2160_v7 = vcombine.high %v2015_v46, %v2019_v18  ;;  %v2242_v54 = vrot.slane %v2228_v40, %v4156_v27 }
 0x35b   :  { %2361 = vrot.lane.b32.xlu1 %v2138_v25, %s2821_s3  ;;  %2305 = vrot.lane.b32.xlu0 %v2070_v44, %s2821_s3  ;;  %v2190_v16 = vrot.slane %v2176_v2, %v4156_v27  ;;  %v2206_v17 = vrot.slane %v2192_v10, %v4176_v28  ;;  %v2140_v33 = vcombine.high %v2106_v24, %v2122_v56  ;;  %v4449_v52 = vmov 0.0  }
 0x35c   :  { %v2079_v22 = vrot.slane %v2071_v15, %v4176_v28  ;;  %v2275_v21 = vcombine.low %v2242_v54, %v2258_v20  ;;  %v2174_v9 = vrot.slane %v2160_v7, %v4156_v27  ;;  %v2072_v11 = vcombine.high %v2038_v57, %v2054_v41 }
 0x35d   :  { %v2154_v3 = vrot.slane %v2140_v33, %v4176_v28  ;;  %v2276_v46 = vcombine.high %v2242_v54, %v2258_v20  ;;  %v2123_v30 = vcombine.low %v2099_v59, %v2115_v12  ;;  %v2055_v27 = vcombine.low %v4180_v53, %v2047_v60 }
 0x35e   :  { %v2283_v42 = vrot.slane %v2275_v21, %v4176_v28  ;;  %v2207_v37 = vcombine.low %v2174_v9, %v2190_v16  ;;  %v2208_v23 = vcombine.high %v2174_v9, %v2190_v16  ;;  %v2086_v55 = vrot.slane %v2072_v11, %v4176_v28 }
 0x35f   :  { %2363 = vrot.lane.b32.xlu1 %v2274_v31, %s2821_s3  ;;  %2377 = vrot.lane.b32.xlu0 %v2147_v19, %s2822_s8  ;;  %v2290_v50 = vrot.slane %v2276_v46, %v4176_v28  ;;  %v2131_v13 = vrot.slane %v2123_v30, %v4176_v28  ;;  %v4222_v1 = vrot.slane %v2055_v27, %v4176_v28 }
 0x360   :  { %v2215_v8 = vrot.slane %v2207_v37, %v4176_v28  ;;  %v2222_v62 = vrot.slane %v2208_v23, %v4176_v28  ;;  %v2259_v6 = vcombine.low %v4191_v45, %v4187_v4  ;;  %v2156_v18 = vcombine.high %v2138_v25, %v4449_v52 }
 0x361   :  { %v2155_v26 = vcombine.high %v2131_v13, %v4449_v52  ;;  %v2087_v35 = vcombine.high %v4222_v1, %v4449_v52  ;;  %v2088_v14 = vcombine.high %v2070_v44, %v4449_v52  ;;  %v2191_v32 = vcombine.low %v2167_v58, %v4196_v63 }
 0x362   :  { %v4234_v47 = vrot.slane %v2259_v6, %v4176_v28  ;;  %v2157_v61 = vcombine.high %v2147_v19, %v4449_v52  ;;  %v2089_v5 = vcombine.high %v2079_v22, %v4449_v52  ;;  %v2292_v29 = vcombine.high %v2274_v31, %v4449_v52 }
 0x363   :  { %2307 = vrot.lane.b32.xlu1 %v2206_v17, %s2821_s3  ;;  %2321 = vrot.lane.b32.xlu0 %v2079_v22, %s2822_s8  ;;  %v4241_v53 = vrot.slane %v2191_v32, %v4176_v28  ;;  %v2158_v59 = vcombine.high %v2154_v3, %v4449_v52  ;;  %v2224_v28 = vcombine.high %v2206_v17, %v4449_v52 }
 0x364   :  { %v2291_v51 = vcombine.high %v4234_v47, %v4449_v52  ;;  %v2090_v60 = vcombine.high %v2086_v55, %v4449_v52  ;;  %v2293_v12 = vcombine.high %v2283_v42, %v4449_v52  ;;  %v2225_v56 = vcombine.high %v2215_v8, %v4449_v52 }
 0x365   :  { %v2223_v43 = vcombine.high %v4241_v53, %v4449_v52  ;;  %v2294_v49 = vcombine.high %v2290_v50, %v4449_v52  ;;  %v2226_v38 = vcombine.high %v2222_v62, %v4449_v52 }
 0x367   :  { %2379 = vrot.lane.b32.xlu1 %v2283_v42, %s2822_s8  ;;  %2393 = vrot.lane.b32.xlu0 %v2154_v3, %s2823_s9 }
 0x36b   :  { %2323 = vrot.lane.b32.xlu1 %v2215_v8, %s2822_s8  ;;  %2337 = vrot.lane.b32.xlu0 %v2086_v55, %s2823_s9 }
 0x36f   :  { %2395 = vrot.lane.b32.xlu1 %v2290_v50, %s2823_s9  ;;  %2339 = vrot.lane.b32.xlu0 %v2222_v62, %s2823_s9 }
 0x373   :  { %2353 = vrot.lane.b32.xlu1 %v2155_v26, %s2824_s10  ;;  %2297 = vrot.lane.b32.xlu0 %v2087_v35, %s2824_s10 }
 0x377   :  { %2369 = vrot.lane.b32.xlu1 %v2156_v18, %s2825_s11  ;;  %2313 = vrot.lane.b32.xlu0 %v2088_v14, %s2825_s11 }
 0x37b   :  { %2355 = vrot.lane.b32.xlu1 %v2291_v51, %s2824_s10  ;;  %2385 = vrot.lane.b32.xlu0 %v2157_v61, %s2826_s12 }
 0x37f   :  { %2299 = vrot.lane.b32.xlu1 %v2223_v43, %s2824_s10  ;;  %2329 = vrot.lane.b32.xlu0 %v2089_v5, %s2826_s12 }
 0x383   :  { %2371 = vrot.lane.b32.xlu1 %v2292_v29, %s2825_s11  ;;  %2401 = vrot.lane.b32.xlu0 %v2158_v59, %s2827_s13 }
 0x387   :  { %2315 = vrot.lane.b32.xlu1 %v2224_v28, %s2825_s11  ;;  %2345 = vrot.lane.b32.xlu0 %v2090_v60, %s2827_s13 }
 0x38b   :  { %2387 = vrot.lane.b32.xlu1 %v2293_v12, %s2826_s12  ;;  %2331 = vrot.lane.b32.xlu0 %v2225_v56, %s2826_s12 }
 0x38f   :  { %2403 = vrot.lane.b32.xlu1 %v2294_v49, %s2827_s13  ;;  %2347 = vrot.lane.b32.xlu0 %v2226_v38, %s2827_s13 }
 0x3cd   :  { %v2362_v4 = vpop.permute.xlu1 %2361  ;;  %v2306_v24 = vpop.permute.xlu0 %2305 }
 0x3d1   :  { %v2364_v45 = vpop.permute.xlu1 %2363  ;;  %v2378_v0 = vpop.permute.xlu0 %2377 }
 0x3d5   :  { %v2308_v34 = vpop.permute.xlu1 %2307  ;;  %v2322_v41 = vpop.permute.xlu0 %2321 }
 0x3d9   :  { %v2380_v63 = vpop.permute.xlu1 %2379  ;;  %v2394_v36 = vpop.permute.xlu0 %2393 }
 0x3dd   :  { %v2324_v25 = vpop.permute.xlu1 %2323  ;;  %v2338_v44 = vpop.permute.xlu0 %2337 }
 0x3e1   :  { %v2396_v39 = vpop.permute.xlu1 %2395  ;;  %v2340_v48 = vpop.permute.xlu0 %2339 }
 0x3e5   :  { %v2354_v57 = vpop.permute.xlu1 %2353  ;;  %v2298_v58 = vpop.permute.xlu0 %2297 }
 0x3e6   :  { %v2427_v20 = vsel %vm1622_vm5, %v2131_v13, %v2354_v57  ;;  %v2407_v15 = vsel %vm1622_vm5, %v4222_v1, %v2298_v58  ;;  %v2441_v13 = vld [vmem:[%s4319_s4] sm:$0xff] }
 0x3e7   :  { %v2429_v31 = vsel %vm2409_vm6, %v2427_v20, %v2362_v4  ;;  %v2410_v54 = vsel %vm2409_vm6, %v2407_v15, %v2306_v24 }
 0x3e9   :  { %v2370_v40 = vpop.permute.xlu1 %2369  ;;  %v2314_v2 = vpop.permute.xlu0 %2313 }
 0x3ea   :  { %v2431_v7 = vsel %vm2412_vm7, %v2429_v31, %v2370_v40  ;;  %v2413_v21 = vsel %vm2412_vm7, %v2410_v54, %v2314_v2  ;;  %v2620_v2 = vld [vmem:[%s4320_s5] sm:$0xff]  ;;  %s2785_s5 = scalar_lea.vmem %s2660_s18, 512 }
 0x3eb   :  { %v2433_v16 = vsel %vm2415_vm8, %v2431_v7, %v2378_v0  ;;  %v2416_v9 = vsel %vm2415_vm8, %v2413_v21, %v2322_v41  ;;  %p2786_p8 = scmp.ne.s32.totalorder %s2660_s18, %s2785_s5  ;;  %p2791_p10 = scmp.lt.s32.totalorder %s2785_s5, %s2785_s5 }
 0x3ed   :  { %v2356_v19 = vpop.permute.xlu1 %2355  ;;  %v2386_v10 = vpop.permute.xlu0 %2385  ;;  %p2792_p11 = por %p2791_p10, %p2790_p9 }
 0x3ee   :  { %v2435_v33 = vsel %vm2418_vm9, %v2433_v16, %v2386_v10  ;;  %v2428_v11 = vsel %vm1622_vm5, %v4234_v47, %v2356_v19  ;;  %v2624_v19 = vld [vmem:[%s4321_s6] sm:$0xff] }
 0x3ef   :  { %v2437_v37 = vsel %vm2421_vm10, %v2435_v33, %v2394_v36  ;;  %v2430_v55 = vsel %vm2409_vm6, %v2428_v11, %v2364_v45  ;;  %p2793_p12 = pnand %p2792_p11, %p2786_p8 }
 0x3f1   :  { %v2300_v17 = vpop.permute.xlu1 %2299  ;;  %v2330_v22 = vpop.permute.xlu0 %2329 }
 0x3f2   :  { %v2408_v46 = vsel %vm1622_vm5, %v4241_v53, %v2300_v17  ;;  %v2419_v23 = vsel %vm2418_vm9, %v2416_v9, %v2330_v22 }
 0x3f3   :  { %v2411_v30 = vsel %vm2409_vm6, %v2408_v46, %v2308_v34  ;;  %v2422_v62 = vsel %vm2421_vm10, %v2419_v23, %v2338_v44 }
 0x3f5   :  { %v2372_v42 = vpop.permute.xlu1 %2371  ;;  %v2402_v3 = vpop.permute.xlu0 %2401 }
 0x3f6   :  { %v2439_v8 = vsel %vm2424_vm11, %v2437_v37, %v2402_v3  ;;  %v2432_v1 = vsel %vm2412_vm7, %v2430_v55, %v2372_v42 }
 0x3f7   :  { %2707 = vmatprep.subr.msk.mxu0 %vm2446_vm12, %v2439_v8  ;;  %v2434_v35 = vsel %vm2415_vm8, %v2432_v1, %v2380_v63 }
 0x3f9   :  { %v2316_v27 = vpop.permute.xlu1 %2315  ;;  %v2346_v50 = vpop.permute.xlu0 %2345 }
 0x3fa   :  { %v2414_v52 = vsel %vm2412_vm7, %v2411_v30, %v2316_v27  ;;  %v2425_v26 = vsel %vm2424_vm11, %v2422_v62, %v2346_v50 }
 0x3fb   :  { %2708 = vmatpush1.msk.msra.mxu0 %vm2446_vm12, %v2425_v26  ;;  %v2417_v18 = vsel %vm2415_vm8, %v2414_v52, %v2324_v25 }
 0x3fc   :  { %2709 = vmatmul.mubr.msk.f32.vlgmr.msra.gmra.mrb[0].mxu0 %vm2442_vm13, %v2441_v13 }
 0x3fd   :  { %v2388_v6 = vpop.permute.xlu1 %2387  ;;  %v2332_v14 = vpop.permute.xlu0 %2331 }
 0x3fe   :  { %v2436_v47 = vsel %vm2418_vm9, %v2434_v35, %v2388_v6  ;;  %v2420_v32 = vsel %vm2418_vm9, %v2417_v18, %v2332_v14 }
 0x3ff   :  { %v2438_v53 = vsel %vm2421_vm10, %v2436_v47, %v2396_v39  ;;  %v2423_v43 = vsel %vm2421_vm10, %v2420_v32, %v2340_v48 }
 0x401   :  { %v2404_v51 = vpop.permute.xlu1 %2403  ;;  %v2348_v61 = vpop.permute.xlu0 %2347 }
 0x402   :  { %v2440_v5 = vsel %vm2424_vm11, %v2438_v53, %v2404_v51  ;;  %v2426_v29 = vsel %vm2424_vm11, %v2423_v43, %v2348_v61 }
 0x403   :  { %2710 = vmatprep.subr.msk.mxu1 %vm2446_vm12, %v2440_v5 }
 0x404   :  { %2711 = vmatpush1.msk.msra.mxu1 %vm2446_vm12, %v2426_v29 }
 0x405   :  { %2712 = vmatmul.mubr.msk.f32.vlgmr.msra.gmra.mrb[0].mxu1 %vm2442_vm13, %v2441_v13 }
 0x4cf   :  { %v2525_v59 = vpop.f32.mrb[0].mxu0 }
 0x4d0   :  { %v2607_v28 = vmul.f32 %v2525_v59, %v2525_v59  ;;  %v2527_v60 = vpop.f32.mrb[1].mxu0 }
 0x4d1   :  { %v2601_v12 = vadd.f32 %v2527_v60, %v2525_v59  ;;  %v2608_v56 = vmul.f32 %v2527_v60, %v2527_v60 }
 0x4d3   :  { %v2611_v49 = vadd.f32 %v2608_v56, %v2607_v28 }
 0x4d8   :  { %v2596_v38 = vpop.f32.mrb[0].mxu1 }
 0x4d9   :  { %v2602_v4 = vadd.f32 %v2601_v12, %v2596_v38  ;;  %v2609_v24 = vmul.f32 %v2596_v38, %v2596_v38  ;;  %v2598_v45 = vpop.f32.mrb[1].mxu1 }
 0x4da   :  { %v2610_v0 = vmul.f32 %v2598_v45, %v2598_v45 }
 0x4db   :  { %v2612_v34 = vadd.f32 %v2611_v49, %v2609_v24  ;;  %v2603_v41 = vadd.f32 %v2602_v4, %v2598_v45 }
 0x4dd   :  { %v2613_v63 = vadd.f32 %v2612_v34, %v2610_v0  ;;  %2604 = vadd.xlane.f32.xlu1 %v2603_v41 }
 0x4df   :  { %2614 = vadd.xlane.f32.xlu0 %v2613_v63 }
 0x56a   :  { %v2605_v36 = vpop.xlane.xlu1 %2604 }
 0x56b   :  { %v2606_v25 = vmul.f32 0.001953125, %v2605_v36 }
 0x56c   :  { %v2615_v44 = vpop.xlane.xlu0 %2614 }
 0x56d   :  { %v2617_v39 = vmul.f32 %v2606_v25, %v2606_v25  ;;  %v2616_v48 = vmul.f32 0.001953125, %v2615_v44 }
 0x56f   :  { %v2618_v57 = vsub.f32 %v2616_v48, %v2617_v39 }
 0x571   :  { %v2619_v58 = vmax.f32 %v2618_v57, 0.0 }
 0x573   :  { %v2621_v40 = vadd.f32 1e-05, %v2619_v58 }
 0x575   :  { %2742 = vrsqrt.f32 %v2621_v40 }
 0x57f   :  { %v2743_v20 = vpop.eup %2742 }
 0x580   :  { %v2623_v31 = vmul.f32 %v2743_v20, %v2620_v2 }
 0x582   :  { %2629 = vperm.xlu0 %2732, %v2623_v31   ;;  %v2625_v10 = vmul.f32 %v2623_v31, %v2606_v25 }
 0x584   :  { %v2626_v15 = vsub.f32 %v2624_v19, %v2625_v10 }
 0x586   :  { %2638 = vperm.xlu1 %2733, %v2626_v15  }
 0x601   :  { %v2630_v7 = vpop.permute.xlu0 %2629 }
 0x602   :  { %v2632_v54 = vmul.f32 %v2630_v7, %v2525_v59  ;;  %v2633_v16 = vmul.f32 %v2630_v7, %v2527_v60  ;;  %v2634_v17 = vmul.f32 %v2630_v7, %v2596_v38  ;;  %v2635_v22 = vmul.f32 %v2630_v7, %v2598_v45 }
 0x605   :  { %v2639_v21 = vpop.permute.xlu1 %2638 }
 0x606   :  { %v2641_v33 = vadd.f32 %v2639_v21, %v2632_v54  ;;  %v2642_v9 = vadd.f32 %v2639_v21, %v2633_v16  ;;  %v2643_v42 = vadd.f32 %v2639_v21, %v2634_v17  ;;  %v2644_v3 = vadd.f32 %v2639_v21, %v2635_v22 }
 0x608   :  { %v2645_v37 = vmax.f32 %v2641_v33, 0.0  ;;  %v2646_v11 = vmax.f32 %v2642_v9, 0.0  ;;  %v2647_v46 = vmax.f32 %v2643_v42, 0.0  ;;  %v2648_v23 = vmax.f32 %v2644_v3, 0.0 }
 0x60a   :  { %2649 = vst [vmem:[#allocation6] sm:$0xff] %v2645_v37  ;;  %2650 = vst [vmem:[#allocation6 + $0x8] sm:$0xff] %v2646_v11 }
 0x60b   :  { %2652 = vst [vmem:[#allocation6 + $0x10] sm:$0xff] %v2647_v46  ;;  %2653 = vst [vmem:[#allocation6 + $0x18] sm:$0xff] %v2648_v23 }
 0x60c   :  { %2796 = shalt.err (!%p2793_p12)
}
 0x60d   :  { %s2797_s20 = scalar_lea.hbm %s4322_s7, 512 }
 0x60e   :  { %p2798_p13 = scmp.ne.s32.totalorder %s4322_s7, %s2797_s20  ;;  %p2801_p0 = scmp.lt.u32.totalorder %s2797_s20, %s4322_s7 }
 0x610   :  { %p2803_p1 = pnand %p2801_p0, %p2798_p13 }
 0x612   :  { %2806 = shalt.err (!%p2803_p1)
}
 0x613   :  { %s2829_s25 = smov 256  }
 0x614   :  { %2665 = dma.vmem_to_hbm [thread:$0]  %s2660_s18, 512, %s4322_s7, [#allocation5], %s2829_s25, %s2829_s25, %s2824_s10  }
 0x615   :  { %2809 = dma.done.wait [#allocation5], 512  }
 0x616   :  { %2810 = vsyncadd [#allocation5], 4294966784 }
 0x617   :  { %2669 = vsyncpa [#allocation4], 1 }
 0x618   :  { %2670 = vsyncpa [#allocation5], 1 }

</bundles_post_ra>
